<compile_context>
chip_gen: v7x
topology: tpu7x:2x2x1
jax: 0.10.0
libtpu: 0.0.40
codegen_flags: <defaults>
</compile_context>

<pallas_src>
import functools
import numpy as np
import jax
import jax.numpy as jnp
from jax import lax
from jax.experimental import pallas as pl
from jax.experimental.pallas import tpu as pltpu

MAX_NUM_NODES = 28
NUM_CAND = 7                      # len(candidate_set)
NFEAT = 7                         # nfeat (== NUM_CAND)
N = MAX_NUM_NODES + NUM_CAND      # 35 total nodes (graph slots + candidates)
NROW = 40                         # padded node count   (sublane axis, mult of 8)
FP = 128                          # padded feature width (lane axis)

# layer dims (in, out), matching the PyTorch __init__
DIMS = {
    "fc":  (NFEAT, 8),
    "gc1": (8, 16),
    "gc2": (16, 24),
    "gc3": (24, 32),
    "m1a": (32, 16),
    "m1b": (16, 1),
    "m2a": (64, 24),
    "m2b": (24, 1),
}


# ----------------------------------------------------------------------------
# Pallas kernel: fc -> gc1 -> gc2 -> gc3 -> folded mlp1 / softmax / argmax
#                -> folded mlp2 / softmax / argmax
# ----------------------------------------------------------------------------
def _generator_kernel(num_nodes_ref,                       # SMEM (1,) int32
                      feat_ref, adj_ref, mask_start_ref,   # VMEM padded inputs
                      w_ref, b_ref,                        # packed param slabs
                      probs_ref, idx_ref):
    f32 = jnp.float32
    dot = functools.partial(jnp.dot, preferred_element_type=f32)
    relu6 = lambda v: jnp.clip(v, 0.0, 6.0)

    feat = feat_ref[...]                                   # (NROW, FP)
    adj = adj_ref[...]                                     # (NROW, NROW)

    # bias slab rows: 0=fc, 1=gc1, 2=gc2, 3=gc3, 4=[b1_fold, b2_fold, ...]
    bfc = b_ref[0:1, :]
    bg1 = b_ref[1:2, :]
    bg2 = b_ref[2:3, :]
    bg3 = b_ref[3:4, :]
    b1 = b_ref[4:5, 0:1]                                   # (1, 1)
    b2 = b_ref[4:5, 1:2]                                   # (1, 1)

    # fc + 3x GraphConvolution  (gc(x, adj) = adj @ (x @ W) + b)
    h = relu6(dot(feat, w_ref[:, 0:FP]) + bfc)
    h = relu6(dot(adj, dot(h, w_ref[:, FP:2 * FP])) + bg1)
    h = relu6(dot(adj, dot(h, w_ref[:, 2 * FP:3 * FP])) + bg2)
    x = relu6(dot(adj, dot(h, w_ref[:, 3 * FP:4 * FP])) + bg3)   # real (35, 32)

    # Both folded heads in one matmul:
    #   col 0 = x @ (W1a@W1b),  col 1 = x @ W2a_top', col 2 = x @ W2a_bot'
    hd = dot(x, w_ref[:, 4 * FP:5 * FP])                   # (NROW, FP)

    row = lax.broadcasted_iota(jnp.int32, (NROW, 1), 0)
    valid = row < N

    # ---------------- mlp1 (folded) -> p_start / a_start ----------------
    l1 = hd[:, 0:1] + b1                                   # (NROW, 1)
    mask_s = mask_start_ref[...] > 0.5                     # True => masked
    z = jnp.where(mask_s, 0.0, l1)
    z = jnp.where(valid, z, -jnp.inf)                      # exclude padded rows
    m = jnp.max(z)
    e = jnp.where(valid, jnp.exp(z - m), 0.0)
    p_start = e / jnp.sum(e)

    arg_in = jnp.where(valid, jnp.where(mask_s, -1.0, p_start), -2.0)
    best = jnp.max(arg_in)
    a_start = jnp.min(jnp.where(arg_in == best, row, NROW)).astype(jnp.int32)

    # ---------------- mlp2 (folded) -> p_end / a_end ----------------
    # cat((x, broadcast(x[a_start])), 1) @ Wm2a @ Wm2b
    #   == x @ Wtop' + (x @ Wbot')[a_start] + b2'
    onehot = (row == a_start).astype(f32)                  # (NROW, 1)
    sel = jnp.sum(hd[:, 2:3] * onehot)                     # scalar (x@Wbot')[a_start]
    l2 = hd[:, 1:2] + sel + b2                             # (NROW, 1)

    nn_val = num_nodes_ref[0]
    mask_e = jnp.logical_and(row >= nn_val, row < MAX_NUM_NODES)
    mask_e = jnp.logical_or(mask_e, row == a_start)        # True => masked
    z2 = jnp.where(mask_e, 0.0, l2)
    z2 = jnp.where(valid, z2, -jnp.inf)
    m2 = jnp.max(z2)
    e2 = jnp.where(valid, jnp.exp(z2 - m2), 0.0)
    p_end = e2 / jnp.sum(e2)

    arg2 = jnp.where(valid, jnp.where(mask_e, -1.0, p_end), -2.0)
    best2 = jnp.max(arg2)
    a_end = jnp.min(jnp.where(arg2 == best2, row, NROW)).astype(jnp.int32)

    # merged outputs
    probs_ref[:, 0:1] = p_start
    probs_ref[:, 1:2] = p_end
    idx_ref[0] = a_start
    idx_ref[1] = a_end


def _run_kernel(num_nodes, feat_p, adj_p, mask_p, w_slab, b_slab):
    vspec = lambda shape: pl.BlockSpec(shape, lambda i: (0, 0))
    in_specs = [pl.BlockSpec(memory_space=pltpu.MemorySpace.SMEM),   # num_nodes
                vspec((NROW, FP)),                                   # feat
                vspec((NROW, NROW)),                                 # adj
                vspec((NROW, 1)),                                    # mask_start
                vspec((FP, 5 * FP)),                                 # weight slab
                vspec((8, FP))]                                      # bias slab
    out_specs = [vspec((NROW, 2)),
                 pl.BlockSpec(memory_space=pltpu.MemorySpace.SMEM)]
    out_shape = [jax.ShapeDtypeStruct((NROW, 2), jnp.float32),
                 jax.ShapeDtypeStruct((2,), jnp.int32)]
    return pl.pallas_call(
        _generator_kernel,
        grid=(1,),
        in_specs=in_specs,
        out_specs=out_specs,
        out_shape=out_shape,
        compiler_params=pltpu.CompilerParams(
            dimension_semantics=("arbitrary",)),
    )(num_nodes, feat_p, adj_p, mask_p, w_slab, b_slab)


# ----------------------------------------------------------------------------
# Parameter init / packing (deterministic, synthetic)
# ----------------------------------------------------------------------------
def init_params(key):
    params = {}
    names = list(DIMS.keys())
    keys = jax.random.split(key, 2 * len(names))
    for i, name in enumerate(names):
        fin, fout = DIMS[name]
        bound = 1.0 / np.sqrt(fin)
        w = jax.random.uniform(keys[2 * i], (fin, fout), minval=-bound,
                               maxval=bound, dtype=jnp.float32)
        b = jax.random.uniform(keys[2 * i + 1], (fout,), minval=-bound,
                               maxval=bound, dtype=jnp.float32)
        params[name] = (w, b)
    return params


def pack_params(params):
    """Fold the two linear heads and pack everything into two slabs."""
    wfc, bfc = params["fc"]
    wg1, bg1 = params["gc1"]
    wg2, bg2 = params["gc2"]
    wg3, bg3 = params["gc3"]
    w1a, b1a = params["m1a"]
    w1b, b1b = params["m1b"]
    w2a, b2a = params["m2a"]
    w2b, b2b = params["m2b"]

    # mlp1 fold: (x @ W1a + b1a) @ W1b + b1b == x @ (W1a@W1b) + (b1a@W1b + b1b)
    w1 = w1a @ w1b                          # (32, 1)
    b1 = b1a @ w1b + b1b                    # (1,)
    # mlp2 fold (split W2a over [x, x[a_start]] halves)
    w2top = w2a[:32] @ w2b                  # (32, 1)
    w2bot = w2a[32:] @ w2b                  # (32, 1)
    b2 = b2a @ w2b + b2b                    # (1,)

    W = jnp.zeros((FP, 5 * FP), jnp.float32)
    W = W.at[:7, 0:8].set(wfc)                              # block 0: fc
    W = W.at[:8, FP:FP + 16].set(wg1)                       # block 1: gc1
    W = W.at[:16, 2 * FP:2 * FP + 24].set(wg2)              # block 2: gc2
    W = W.at[:24, 3 * FP:3 * FP + 32].set(wg3)              # block 3: gc3
    W = W.at[:32, 4 * FP + 0:4 * FP + 1].set(w1)            # block 4, col 0
    W = W.at[:32, 4 * FP + 1:4 * FP + 2].set(w2top)         # block 4, col 1
    W = W.at[:32, 4 * FP + 2:4 * FP + 3].set(w2bot)         # block 4, col 2

    B = jnp.zeros((8, FP), jnp.float32)
    B = B.at[0, :8].set(bfc)
    B = B.at[1, :16].set(bg1)
    B = B.at[2, :24].set(bg2)
    B = B.at[3, :32].set(bg3)
    B = B.at[4, 0].set(b1[0])
    B = B.at[4, 1].set(b2[0])
    return W, B


# ----------------------------------------------------------------------------
# Forward wrapper (padding glue + graph update in plain JAX; jit-compiled)
# ----------------------------------------------------------------------------
def generator_forward(w_slab, b_slab, G):
    feat_p = jnp.zeros((NROW, FP), jnp.float32).at[:N, :NUM_CAND].set(G["feat"])
    adj_p = jnp.zeros((NROW, NROW), jnp.float32).at[:N, :N].set(G["adj"])
    mask_p = jnp.zeros((NROW, 1), jnp.float32).at[:N, 0].set(
        G["mask_start"].astype(jnp.float32))
    nn_in = jnp.reshape(G["num_nodes"].astype(jnp.int32), (1,))

    probs, idx = _run_kernel(nn_in, feat_p, adj_p, mask_p, w_slab, b_slab)
    p_start = probs[:N, 0:1]
    p_end = probs[:N, 1:2]
    a_start, a_end = idx[0], idx[1]

    G_new = _update_graph(G, a_start, a_end)
    return p_start, a_start, p_end, a_end, G_new


def _update_graph(G, a_start, a_end):
    adj, feat = G["adj"], G["feat"]
    deg, mask_start, nn_ = G["degrees"], G["mask_start"], G["num_nodes"]
    existing = jnp.logical_not(mask_start[a_end])      # a_end already in graph?
    tgt = jnp.where(existing, a_end, nn_)
    adj = adj.at[tgt, a_start].add(1.0)
    adj = adj.at[a_start, tgt].add(1.0)
    deg = deg.at[a_start].add(1.0)
    deg = deg.at[nn_].add(1.0)
    new_row = jnp.where(existing, feat[nn_], feat[a_end])
    feat = feat.at[nn_].set(new_row)
    ms_val = jnp.where(existing, mask_start[nn_], False)
    mask_start = mask_start.at[nn_].set(ms_val)
    nn_new = nn_ + jnp.where(existing, 0, 1).astype(nn_.dtype)
    return {"adj": adj, "feat": feat, "degrees": deg,
            "num_nodes": nn_new, "mask_start": mask_start}


def reset_graph(start=0):
    adj = jnp.zeros((N, N), jnp.float32)
    feat = jnp.zeros((N, NUM_CAND), jnp.float32)
    feat = feat.at[0, start].set(1.0)
    feat = feat.at[jnp.arange(MAX_NUM_NODES, N), jnp.arange(NUM_CAND)].set(1.0)
    return {"adj": adj, "feat": feat,
            "degrees": jnp.zeros((MAX_NUM_NODES,), jnp.float32),
            "num_nodes": jnp.array(1, jnp.int32),
            "mask_start": jnp.arange(N) != 0}


# ----------------------------------------------------------------------------
# Pure-JAX reference (unpadded, unfolded heads) for correctness check
# ----------------------------------------------------------------------------
def forward_ref(params, G):
    relu6 = lambda v: jnp.clip(v, 0.0, 6.0)
    wfc, bfc = params["fc"]
    wg1, bg1 = params["gc1"]
    wg2, bg2 = params["gc2"]
    wg3, bg3 = params["gc3"]
    x, adj = G["feat"], G["adj"]
    x = relu6(x @ wfc + bfc)
    x = relu6(adj @ (x @ wg1) + bg1)
    x = relu6(adj @ (x @ wg2) + bg2)
    x = relu6(adj @ (x @ wg3) + bg3)
    w1a, b1a = params["m1a"]; w1b, b1b = params["m1b"]
    p = (x @ w1a + b1a) @ w1b + b1b
    mask_s = G["mask_start"][:, None]
    p = jnp.where(mask_s, 0.0, p)
    p_start = jax.nn.softmax(p, axis=0)
    a_start = jnp.argmax(jnp.where(mask_s, -1.0, p_start))
    xc = jnp.concatenate([x, jnp.broadcast_to(x[a_start], x.shape)], axis=1)
    w2a, b2a = params["m2a"]; w2b, b2b = params["m2b"]
    pe = (xc @ w2a + b2a) @ w2b + b2b
    idx = jnp.arange(N)
    mask_e = ((idx >= G["num_nodes"]) & (idx < MAX_NUM_NODES)) | (idx == a_start)
    mask_e = mask_e[:, None]
    pe = jnp.where(mask_e, 0.0, pe)
    p_end = jax.nn.softmax(pe, axis=0)
    a_end = jnp.argmax(jnp.where(mask_e, -1.0, p_end))
    return p_start, a_start, p_end, a_end


if __name__ == "__main__":
    key = jax.random.PRNGKey(0)
    params = init_params(key)
    w_slab, b_slab = pack_params(params)
    G = reset_graph(start=0)

    fwd = jax.jit(generator_forward)

    # ---- step 1 ----
    p_start, a_start, p_end, a_end, G1 = fwd(w_slab, b_slab, G)
    jax.block_until_ready((p_start, p_end, a_start, a_end, G1["adj"]))

    ps_ref, as_ref, pe_ref, ae_ref = forward_ref(params, G)
    assert np.allclose(np.asarray(p_start), np.asarray(ps_ref), atol=1e-4), "p_start mismatch"
    assert np.allclose(np.asarray(p_end), np.asarray(pe_ref), atol=1e-4), "p_end mismatch"
    assert int(a_start) == int(as_ref), "a_start mismatch"
    assert int(a_end) == int(ae_ref), "a_end mismatch"

    # ---- step 2 (chained on the updated graph) ----
    p2s, a2s, p2e, a2e, G2 = fwd(w_slab, b_slab, G1)
    jax.block_until_ready((p2s, p2e, G2["adj"]))
    ps2_ref, as2_ref, pe2_ref, ae2_ref = forward_ref(params, G1)
    assert np.allclose(np.asarray(p2s), np.asarray(ps2_ref), atol=1e-4), "step2 p_start mismatch"
    assert np.allclose(np.asarray(p2e), np.asarray(pe2_ref), atol=1e-4), "step2 p_end mismatch"
    assert int(a2s) == int(as2_ref), "step2 a_start mismatch"
    assert int(a2e) == int(ae2_ref), "step2 a_end mismatch"

    print("KERNEL_OK")
</pallas_src>

<mosaic_0001>
module attributes {stable_mosaic.version = 11 : i64} {
  func.func @_generator_kernel(%arg0: i32, %arg1: memref<1xi32, #tpu.memory_space<smem>>, %arg2: memref<40x128xf32, #tpu.memory_space<vmem>>, %arg3: memref<40x40xf32, #tpu.memory_space<vmem>>, %arg4: memref<40x1xf32, #tpu.memory_space<vmem>>, %arg5: memref<128x640xf32, #tpu.memory_space<vmem>>, %arg6: memref<8x128xf32, #tpu.memory_space<vmem>>, %arg7: memref<40x2xf32, #tpu.memory_space<vmem>>, %arg8: memref<2xi32, #tpu.memory_space<smem>>) attributes {dimension_semantics = [#tpu.dimension_semantics<arbitrary>], iteration_bounds = array<i64: 1>, scalar_prefetch = 0 : i64, scratch_operands = 0 : i64, tpu.core_type = #tpu.core_type<tc>, window_params = [{transform_indices = @transform_0, window_bounds = array<i64: 1>}, {pipeline_mode = #tpu.pipeline_mode<synchronous>, transform_indices = @transform_1, window_bounds = array<i64: 40, 128>}, {pipeline_mode = #tpu.pipeline_mode<synchronous>, transform_indices = @transform_2, window_bounds = array<i64: 40, 40>}, {pipeline_mode = #tpu.pipeline_mode<synchronous>, transform_indices = @transform_3, window_bounds = array<i64: 40, 1>}, {pipeline_mode = #tpu.pipeline_mode<synchronous>, transform_indices = @transform_4, window_bounds = array<i64: 128, 640>}, {pipeline_mode = #tpu.pipeline_mode<synchronous>, transform_indices = @transform_5, window_bounds = array<i64: 8, 128>}, {pipeline_mode = #tpu.pipeline_mode<synchronous>, transform_indices = @transform_6, window_bounds = array<i64: 40, 2>}, {transform_indices = @transform_7, window_bounds = array<i64: 2>}]} {
    %c0 = arith.constant 0 : index
    %c0_0 = arith.constant 0 : index
    %0 = vector.load %arg2[%c0, %c0_0] : memref<40x128xf32, #tpu.memory_space<vmem>>, vector<40x128xf32>
    %c0_1 = arith.constant 0 : index
    %c0_2 = arith.constant 0 : index
    %1 = vector.load %arg3[%c0_1, %c0_2] : memref<40x40xf32, #tpu.memory_space<vmem>>, vector<40x40xf32>
    %c0_3 = arith.constant 0 : index
    %c0_4 = arith.constant 0 : index
    %2 = vector.load %arg6[%c0_3, %c0_4] : memref<8x128xf32, #tpu.memory_space<vmem>>, vector<1x128xf32>
    %c1 = arith.constant 1 : index
    %c0_5 = arith.constant 0 : index
    %3 = vector.load %arg6[%c1, %c0_5] : memref<8x128xf32, #tpu.memory_space<vmem>>, vector<1x128xf32>
    %c2 = arith.constant 2 : index
    %c0_6 = arith.constant 0 : index
    %4 = vector.load %arg6[%c2, %c0_6] : memref<8x128xf32, #tpu.memory_space<vmem>>, vector<1x128xf32>
    %c3 = arith.constant 3 : index
    %c0_7 = arith.constant 0 : index
    %5 = vector.load %arg6[%c3, %c0_7] : memref<8x128xf32, #tpu.memory_space<vmem>>, vector<1x128xf32>
    %c4 = arith.constant 4 : index
    %c0_8 = arith.constant 0 : index
    %6 = vector.load %arg6[%c4, %c0_8] : memref<8x128xf32, #tpu.memory_space<vmem>>, vector<1x1xf32>
    %c4_9 = arith.constant 4 : index
    %c1_10 = arith.constant 1 : index
    %7 = vector.load %arg6[%c4_9, %c1_10] : memref<8x128xf32, #tpu.memory_space<vmem>>, vector<1x1xf32>
    %c0_11 = arith.constant 0 : index
    %c0_12 = arith.constant 0 : index
    %8 = vector.load %arg5[%c0_11, %c0_12] : memref<128x640xf32, #tpu.memory_space<vmem>>, vector<128x128xf32>
    %cst = arith.constant dense<0.000000e+00> : vector<40x128xf32>
    %9 = tpu.matmul %0, %8, %cst {dimension_numbers = #tpu.dot_dimension_numbers<[1], [0], [0], [1], [0, 0, 1, 1], [], []>} : vector<40x128xf32>, vector<128x128xf32>, vector<40x128xf32> -> vector<40x128xf32>
    %10 = vector.broadcast %2 : vector<1x128xf32> to vector<40x128xf32>
    %11 = arith.addf %9, %10 : vector<40x128xf32>
    %cst_13 = arith.constant 0.000000e+00 : f32
    %cst_14 = arith.constant 6.000000e+00 : f32
    %12 = vector.broadcast %cst_13 : f32 to vector<40x128xf32>
    %13 = arith.maximumf %12, %11 : vector<40x128xf32>
    %14 = vector.broadcast %cst_14 : f32 to vector<40x128xf32>
    %15 = arith.minimumf %14, %13 : vector<40x128xf32>
    %c0_15 = arith.constant 0 : index
    %c128 = arith.constant 128 : index
    %16 = vector.load %arg5[%c0_15, %c128] : memref<128x640xf32, #tpu.memory_space<vmem>>, vector<128x128xf32>
    %cst_16 = arith.constant dense<0.000000e+00> : vector<40x128xf32>
    %17 = tpu.matmul %15, %16, %cst_16 {dimension_numbers = #tpu.dot_dimension_numbers<[1], [0], [0], [1], [0, 0, 1, 1], [], []>} : vector<40x128xf32>, vector<128x128xf32>, vector<40x128xf32> -> vector<40x128xf32>
    %cst_17 = arith.constant dense<0.000000e+00> : vector<40x128xf32>
    %18 = tpu.matmul %1, %17, %cst_17 {dimension_numbers = #tpu.dot_dimension_numbers<[1], [0], [0], [1], [0, 0, 1, 1], [], []>} : vector<40x40xf32>, vector<40x128xf32>, vector<40x128xf32> -> vector<40x128xf32>
    %19 = vector.broadcast %3 : vector<1x128xf32> to vector<40x128xf32>
    %20 = arith.addf %18, %19 : vector<40x128xf32>
    %cst_18 = arith.constant 0.000000e+00 : f32
    %cst_19 = arith.constant 6.000000e+00 : f32
    %21 = vector.broadcast %cst_18 : f32 to vector<40x128xf32>
    %22 = arith.maximumf %21, %20 : vector<40x128xf32>
    %23 = vector.broadcast %cst_19 : f32 to vector<40x128xf32>
    %24 = arith.minimumf %23, %22 : vector<40x128xf32>
    %c0_20 = arith.constant 0 : index
    %c256 = arith.constant 256 : index
    %25 = vector.load %arg5[%c0_20, %c256] : memref<128x640xf32, #tpu.memory_space<vmem>>, vector<128x128xf32>
    %cst_21 = arith.constant dense<0.000000e+00> : vector<40x128xf32>
    %26 = tpu.matmul %24, %25, %cst_21 {dimension_numbers = #tpu.dot_dimension_numbers<[1], [0], [0], [1], [0, 0, 1, 1], [], []>} : vector<40x128xf32>, vector<128x128xf32>, vector<40x128xf32> -> vector<40x128xf32>
    %cst_22 = arith.constant dense<0.000000e+00> : vector<40x128xf32>
    %27 = tpu.matmul %1, %26, %cst_22 {dimension_numbers = #tpu.dot_dimension_numbers<[1], [0], [0], [1], [0, 0, 1, 1], [], []>} : vector<40x40xf32>, vector<40x128xf32>, vector<40x128xf32> -> vector<40x128xf32>
    %28 = vector.broadcast %4 : vector<1x128xf32> to vector<40x128xf32>
    %29 = arith.addf %27, %28 : vector<40x128xf32>
    %cst_23 = arith.constant 0.000000e+00 : f32
    %cst_24 = arith.constant 6.000000e+00 : f32
    %30 = vector.broadcast %cst_23 : f32 to vector<40x128xf32>
    %31 = arith.maximumf %30, %29 : vector<40x128xf32>
    %32 = vector.broadcast %cst_24 : f32 to vector<40x128xf32>
    %33 = arith.minimumf %32, %31 : vector<40x128xf32>
    %c0_25 = arith.constant 0 : index
    %c384 = arith.constant 384 : index
    %34 = vector.load %arg5[%c0_25, %c384] : memref<128x640xf32, #tpu.memory_space<vmem>>, vector<128x128xf32>
    %cst_26 = arith.constant dense<0.000000e+00> : vector<40x128xf32>
    %35 = tpu.matmul %33, %34, %cst_26 {dimension_numbers = #tpu.dot_dimension_numbers<[1], [0], [0], [1], [0, 0, 1, 1], [], []>} : vector<40x128xf32>, vector<128x128xf32>, vector<40x128xf32> -> vector<40x128xf32>
    %cst_27 = arith.constant dense<0.000000e+00> : vector<40x128xf32>
    %36 = tpu.matmul %1, %35, %cst_27 {dimension_numbers = #tpu.dot_dimension_numbers<[1], [0], [0], [1], [0, 0, 1, 1], [], []>} : vector<40x40xf32>, vector<40x128xf32>, vector<40x128xf32> -> vector<40x128xf32>
    %37 = vector.broadcast %5 : vector<1x128xf32> to vector<40x128xf32>
    %38 = arith.addf %36, %37 : vector<40x128xf32>
    %cst_28 = arith.constant 0.000000e+00 : f32
    %cst_29 = arith.constant 6.000000e+00 : f32
    %39 = vector.broadcast %cst_28 : f32 to vector<40x128xf32>
    %40 = arith.maximumf %39, %38 : vector<40x128xf32>
    %41 = vector.broadcast %cst_29 : f32 to vector<40x128xf32>
    %42 = arith.minimumf %41, %40 : vector<40x128xf32>
    %c0_30 = arith.constant 0 : index
    %c512 = arith.constant 512 : index
    %43 = vector.load %arg5[%c0_30, %c512] : memref<128x640xf32, #tpu.memory_space<vmem>>, vector<128x128xf32>
    %cst_31 = arith.constant dense<0.000000e+00> : vector<40x128xf32>
    %44 = tpu.matmul %42, %43, %cst_31 {dimension_numbers = #tpu.dot_dimension_numbers<[1], [0], [0], [1], [0, 0, 1, 1], [], []>} : vector<40x128xf32>, vector<128x128xf32>, vector<40x128xf32> -> vector<40x128xf32>
    %45 = tpu.iota {dimensions = array<i32: 0>} : vector<40x1xi32>
    %c35_i32 = arith.constant 35 : i32
    %46 = vector.broadcast %c35_i32 : i32 to vector<40x1xi32>
    %47 = arith.cmpi slt, %45, %46 : vector<40x1xi32>
    %48 = vector.extract_strided_slice %44 {offsets = [0, 0], sizes = [40, 1], strides = [1, 1]} : vector<40x128xf32> to vector<40x1xf32>
    %49 = vector.broadcast %6 : vector<1x1xf32> to vector<40x1xf32>
    %50 = arith.addf %48, %49 : vector<40x1xf32>
    %c0_32 = arith.constant 0 : index
    %c0_33 = arith.constant 0 : index
    %51 = vector.load %arg4[%c0_32, %c0_33] : memref<40x1xf32, #tpu.memory_space<vmem>>, vector<40x1xf32>
    %cst_34 = arith.constant 5.000000e-01 : f32
    %52 = vector.broadcast %cst_34 : f32 to vector<40x1xf32>
    %53 = arith.cmpf ogt, %51, %52 : vector<40x1xf32>
    %cst_35 = arith.constant 0.000000e+00 : f32
    %54 = vector.broadcast %cst_35 : f32 to vector<40x1xf32>
    %55 = arith.select %53, %54, %50 : vector<40x1xi1>, vector<40x1xf32>
    %cst_36 = arith.constant 0xFF800000 : f32
    %56 = vector.broadcast %cst_36 : f32 to vector<40x1xf32>
    %57 = arith.select %47, %55, %56 : vector<40x1xi1>, vector<40x1xf32>
    %58 = vector.shape_cast %57 : vector<40x1xf32> to vector<1x40x1xf32>
    %cst_37 = arith.constant dense<0xFF800000> : vector<1xf32>
    %59 = vector.multi_reduction <maximumf>, %58, %cst_37 [1, 2] : vector<1x40x1xf32> to vector<1xf32>
    %60 = vector.shape_cast %59 : vector<1xf32> to vector<1x1x1xf32>
    %61 = vector.extract %60[0, 0, 0] : f32 from vector<1x1x1xf32>
    %62 = vector.broadcast %61 : f32 to vector<40x1xf32>
    %63 = arith.subf %57, %62 : vector<40x1xf32>
    %64 = math.exp %63 : vector<40x1xf32>
    %cst_38 = arith.constant 0.000000e+00 : f32
    %65 = vector.broadcast %cst_38 : f32 to vector<40x1xf32>
    %66 = arith.select %47, %64, %65 : vector<40x1xi1>, vector<40x1xf32>
    %67 = vector.shape_cast %66 : vector<40x1xf32> to vector<1x40x1xf32>
    %cst_39 = arith.constant dense<0.000000e+00> : vector<1xf32>
    %68 = vector.multi_reduction <add>, %67, %cst_39 [1, 2] : vector<1x40x1xf32> to vector<1xf32>
    %69 = vector.shape_cast %68 : vector<1xf32> to vector<1x1x1xf32>
    %70 = vector.extract %69[0, 0, 0] : f32 from vector<1x1x1xf32>
    %71 = vector.broadcast %70 : f32 to vector<40x1xf32>
    %72 = arith.divf %66, %71 : vector<40x1xf32>
    %cst_40 = arith.constant -1.000000e+00 : f32
    %73 = vector.broadcast %cst_40 : f32 to vector<40x1xf32>
    %74 = arith.select %53, %73, %72 : vector<40x1xi1>, vector<40x1xf32>
    %cst_41 = arith.constant -2.000000e+00 : f32
    %75 = vector.broadcast %cst_41 : f32 to vector<40x1xf32>
    %76 = arith.select %47, %74, %75 : vector<40x1xi1>, vector<40x1xf32>
    %77 = vector.shape_cast %76 : vector<40x1xf32> to vector<1x40x1xf32>
    %cst_42 = arith.constant dense<0xFF800000> : vector<1xf32>
    %78 = vector.multi_reduction <maximumf>, %77, %cst_42 [1, 2] : vector<1x40x1xf32> to vector<1xf32>
    %79 = vector.shape_cast %78 : vector<1xf32> to vector<1x1x1xf32>
    %80 = vector.extract %79[0, 0, 0] : f32 from vector<1x1x1xf32>
    %81 = vector.broadcast %80 : f32 to vector<40x1xf32>
    %82 = arith.cmpf oeq, %76, %81 : vector<40x1xf32>
    %c40_i32 = arith.constant 40 : i32
    %83 = vector.broadcast %c40_i32 : i32 to vector<40x1xi32>
    %84 = arith.select %82, %45, %83 : vector<40x1xi1>, vector<40x1xi32>
    %85 = vector.shape_cast %84 : vector<40x1xi32> to vector<1x40x1xi32>
    %cst_43 = arith.constant dense<2147483647> : vector<1xi32>
    %86 = vector.multi_reduction <minsi>, %85, %cst_43 [1, 2] : vector<1x40x1xi32> to vector<1xi32>
    %87 = vector.shape_cast %86 : vector<1xi32> to vector<1x1x1xi32>
    %88 = vector.extract %87[0, 0, 0] : i32 from vector<1x1x1xi32>
    %89 = vector.broadcast %88 : i32 to vector<40x1xi32>
    %90 = arith.cmpi eq, %45, %89 : vector<40x1xi32>
    %91 = arith.extui %90 : vector<40x1xi1> to vector<40x1xi32>
    %92 = arith.sitofp %91 : vector<40x1xi32> to vector<40x1xf32>
    %93 = vector.extract_strided_slice %44 {offsets = [0, 2], sizes = [40, 1], strides = [1, 1]} : vector<40x128xf32> to vector<40x1xf32>
    %94 = arith.mulf %93, %92 : vector<40x1xf32>
    %95 = vector.shape_cast %94 : vector<40x1xf32> to vector<1x40x1xf32>
    %cst_44 = arith.constant dense<0.000000e+00> : vector<1xf32>
    %96 = vector.multi_reduction <add>, %95, %cst_44 [1, 2] : vector<1x40x1xf32> to vector<1xf32>
    %97 = vector.shape_cast %96 : vector<1xf32> to vector<1x1x1xf32>
    %98 = vector.extract %97[0, 0, 0] : f32 from vector<1x1x1xf32>
    %99 = vector.extract_strided_slice %44 {offsets = [0, 1], sizes = [40, 1], strides = [1, 1]} : vector<40x128xf32> to vector<40x1xf32>
    %100 = vector.broadcast %98 : f32 to vector<40x1xf32>
    %101 = arith.addf %99, %100 : vector<40x1xf32>
    %102 = vector.broadcast %7 : vector<1x1xf32> to vector<40x1xf32>
    %103 = arith.addf %101, %102 : vector<40x1xf32>
    %c0_45 = arith.constant 0 : index
    %104 = memref.load %arg1[%c0_45] : memref<1xi32, #tpu.memory_space<smem>>
    %105 = vector.broadcast %104 : i32 to vector<40x1xi32>
    %106 = arith.cmpi sge, %45, %105 : vector<40x1xi32>
    %c28_i32 = arith.constant 28 : i32
    %107 = vector.broadcast %c28_i32 : i32 to vector<40x1xi32>
    %108 = arith.cmpi slt, %45, %107 : vector<40x1xi32>
    %109 = arith.andi %106, %108 : vector<40x1xi1>
    %110 = vector.broadcast %88 : i32 to vector<40x1xi32>
    %111 = arith.cmpi eq, %45, %110 : vector<40x1xi32>
    %112 = arith.ori %109, %111 : vector<40x1xi1>
    %cst_46 = arith.constant 0.000000e+00 : f32
    %113 = vector.broadcast %cst_46 : f32 to vector<40x1xf32>
    %114 = arith.select %112, %113, %103 : vector<40x1xi1>, vector<40x1xf32>
    %cst_47 = arith.constant 0xFF800000 : f32
    %115 = vector.broadcast %cst_47 : f32 to vector<40x1xf32>
    %116 = arith.select %47, %114, %115 : vector<40x1xi1>, vector<40x1xf32>
    %117 = vector.shape_cast %116 : vector<40x1xf32> to vector<1x40x1xf32>
    %cst_48 = arith.constant dense<0xFF800000> : vector<1xf32>
    %118 = vector.multi_reduction <maximumf>, %117, %cst_48 [1, 2] : vector<1x40x1xf32> to vector<1xf32>
    %119 = vector.shape_cast %118 : vector<1xf32> to vector<1x1x1xf32>
    %120 = vector.extract %119[0, 0, 0] : f32 from vector<1x1x1xf32>
    %121 = vector.broadcast %120 : f32 to vector<40x1xf32>
    %122 = arith.subf %116, %121 : vector<40x1xf32>
    %123 = math.exp %122 : vector<40x1xf32>
    %cst_49 = arith.constant 0.000000e+00 : f32
    %124 = vector.broadcast %cst_49 : f32 to vector<40x1xf32>
    %125 = arith.select %47, %123, %124 : vector<40x1xi1>, vector<40x1xf32>
    %126 = vector.shape_cast %125 : vector<40x1xf32> to vector<1x40x1xf32>
    %cst_50 = arith.constant dense<0.000000e+00> : vector<1xf32>
    %127 = vector.multi_reduction <add>, %126, %cst_50 [1, 2] : vector<1x40x1xf32> to vector<1xf32>
    %128 = vector.shape_cast %127 : vector<1xf32> to vector<1x1x1xf32>
    %129 = vector.extract %128[0, 0, 0] : f32 from vector<1x1x1xf32>
    %130 = vector.broadcast %129 : f32 to vector<40x1xf32>
    %131 = arith.divf %125, %130 : vector<40x1xf32>
    %cst_51 = arith.constant -1.000000e+00 : f32
    %132 = vector.broadcast %cst_51 : f32 to vector<40x1xf32>
    %133 = arith.select %112, %132, %131 : vector<40x1xi1>, vector<40x1xf32>
    %cst_52 = arith.constant -2.000000e+00 : f32
    %134 = vector.broadcast %cst_52 : f32 to vector<40x1xf32>
    %135 = arith.select %47, %133, %134 : vector<40x1xi1>, vector<40x1xf32>
    %136 = vector.shape_cast %135 : vector<40x1xf32> to vector<1x40x1xf32>
    %cst_53 = arith.constant dense<0xFF800000> : vector<1xf32>
    %137 = vector.multi_reduction <maximumf>, %136, %cst_53 [1, 2] : vector<1x40x1xf32> to vector<1xf32>
    %138 = vector.shape_cast %137 : vector<1xf32> to vector<1x1x1xf32>
    %139 = vector.extract %138[0, 0, 0] : f32 from vector<1x1x1xf32>
    %140 = vector.broadcast %139 : f32 to vector<40x1xf32>
    %141 = arith.cmpf oeq, %135, %140 : vector<40x1xf32>
    %c40_i32_54 = arith.constant 40 : i32
    %142 = vector.broadcast %c40_i32_54 : i32 to vector<40x1xi32>
    %143 = arith.select %141, %45, %142 : vector<40x1xi1>, vector<40x1xi32>
    %144 = vector.shape_cast %143 : vector<40x1xi32> to vector<1x40x1xi32>
    %cst_55 = arith.constant dense<2147483647> : vector<1xi32>
    %145 = vector.multi_reduction <minsi>, %144, %cst_55 [1, 2] : vector<1x40x1xi32> to vector<1xi32>
    %146 = vector.shape_cast %145 : vector<1xi32> to vector<1x1x1xi32>
    %147 = vector.extract %146[0, 0, 0] : i32 from vector<1x1x1xi32>
    %c0_56 = arith.constant 0 : index
    %c0_57 = arith.constant 0 : index
    %148 = vector.load %arg7[%c0_56, %c0_57] : memref<40x2xf32, #tpu.memory_space<vmem>>, vector<40x1xf32>
    tpu.vector_store %arg7[%c0_56, %c0_57], %72 {strides = array<i32>} : memref<40x2xf32, #tpu.memory_space<vmem>>, vector<40x1xf32>,
    %c0_58 = arith.constant 0 : index
    %c1_59 = arith.constant 1 : index
    %149 = vector.load %arg7[%c0_58, %c1_59] : memref<40x2xf32, #tpu.memory_space<vmem>>, vector<40x1xf32>
    tpu.vector_store %arg7[%c0_58, %c1_59], %131 {strides = array<i32>} : memref<40x2xf32, #tpu.memory_space<vmem>>, vector<40x1xf32>,
    %c0_60 = arith.constant 0 : index
    %150 = memref.load %arg8[%c0_60] : memref<2xi32, #tpu.memory_space<smem>>
    memref.store %88, %arg8[%c0_60] : memref<2xi32, #tpu.memory_space<smem>>
    %c1_61 = arith.constant 1 : index
    %151 = memref.load %arg8[%c1_61] : memref<2xi32, #tpu.memory_space<smem>>
    memref.store %147, %arg8[%c1_61] : memref<2xi32, #tpu.memory_space<smem>>
    return
  }
  func.func @transform_0(%arg0: i32) -> i32 {
    %c0_i32 = arith.constant 0 : i32
    %c0_i32_0 = arith.constant 0 : i32
    return %c0_i32 : i32
  }
  func.func @transform_1(%arg0: i32) -> (i32, i32) {
    %c0_i32 = arith.constant 0 : i32
    %c0_i32_0 = arith.constant 0 : i32
    %c0_i32_1 = arith.constant 0 : i32
    return %c0_i32, %c0_i32_0 : i32, i32
  }
  func.func @transform_2(%arg0: i32) -> (i32, i32) {
    %c0_i32 = arith.constant 0 : i32
    %c0_i32_0 = arith.constant 0 : i32
    %c0_i32_1 = arith.constant 0 : i32
    return %c0_i32, %c0_i32_0 : i32, i32
  }
  func.func @transform_3(%arg0: i32) -> (i32, i32) {
    %c0_i32 = arith.constant 0 : i32
    %c0_i32_0 = arith.constant 0 : i32
    %c0_i32_1 = arith.constant 0 : i32
    return %c0_i32, %c0_i32_0 : i32, i32
  }
  func.func @transform_4(%arg0: i32) -> (i32, i32) {
    %c0_i32 = arith.constant 0 : i32
    %c0_i32_0 = arith.constant 0 : i32
    %c0_i32_1 = arith.constant 0 : i32
    return %c0_i32, %c0_i32_0 : i32, i32
  }
  func.func @transform_5(%arg0: i32) -> (i32, i32) {
    %c0_i32 = arith.constant 0 : i32
    %c0_i32_0 = arith.constant 0 : i32
    %c0_i32_1 = arith.constant 0 : i32
    return %c0_i32, %c0_i32_0 : i32, i32
  }
  func.func @transform_6(%arg0: i32) -> (i32, i32) {
    %c0_i32 = arith.constant 0 : i32
    %c0_i32_0 = arith.constant 0 : i32
    %c0_i32_1 = arith.constant 0 : i32
    return %c0_i32, %c0_i32_0 : i32, i32
  }
  func.func @transform_7(%arg0: i32) -> i32 {
    %c0_i32 = arith.constant 0 : i32
    %c0_i32_0 = arith.constant 0 : i32
    return %c0_i32 : i32
  }
}

</mosaic_0001>

<bundles_post_ra>
// kernel: generator_forward.1
= control target key start
LH: loop header
LB: loop body
LE: loop exit
PB: predicated region body
PF: predicated region fallthrough
CT: control target
= control target key end

     0   :  { %14 = vsyncpa [#allocation4], 0  ;;  %s2680_s0 = inlined_call_operand.<no memory space> [shape: s32[1], index: 0, kind: input, shape index: {}]   ;;  %s2681_s1 = inlined_call_operand.vmem [shape: f32[40,128], index: 1, kind: input, shape index: {}]   ;;  %s2682_s2 = inlined_call_operand.vmem [shape: f32[40,40], index: 2, kind: input, shape index: {}]   ;;  %s2683_s3 = inlined_call_operand.vmem [shape: f32[40,1], index: 3, kind: input, shape index: {}]   ;;  %s2684_s4 = inlined_call_operand.hbm [shape: f32[128,640], index: 4, kind: input, shape index: {}]   ;;  %s2685_s5 = inlined_call_operand.vmem [shape: f32[8,128], index: 5, kind: input, shape index: {}]   ;;  %s2686_s6 = inlined_call_operand.vmem [shape: f32[40,2], index: 6, kind: output, shape index: {0}]   ;;  %s2687_s7 = inlined_call_operand.vmem [shape: s32[2], index: 7, kind: output, shape index: {1}]  }
   0x1   :  { %15 = vsyncpa [#allocation5], 0  ;;  %s2103_s24 = smov [#allocation3]   ;;  %s2065_s28 = scalar_lea.hbm %s2684_s4, 10240 }
   0x2   :  { %s29_s25 = sshll.u32 %s2103_s24, 4  ;;  %p2066_p0 = scmp.ne.s32.totalorder %s2684_s4, %s2065_s28  ;;  %s30_s25 = int_to_ptr.vmem [resolvable:$true] %s29_s25 }
   0x3   :  { %p2069_p1 = scmp.lt.u32.totalorder %s2065_s28, %s2684_s4 }
   0x5   :  { %p2071_p2 = pnand %p2069_p1, %p2066_p0 }
   0x7   :  { %2074 = shalt.err (!%p2071_p2)
}
   0x8   :  { %s2075_s10 = scalar_lea.vmem %s30_s25, 10240  ;;  %p2080_p4 = scmp.lt.s32.totalorder %s30_s25, %s30_s25 }
   0x9   :  { %p2076_p3 = scmp.ne.s32.totalorder %s30_s25, %s2075_s10  ;;  %p2081_p5 = scmp.lt.s32.totalorder %s2075_s10, %s2075_s10 }
   0xb   :  { %p2082_p6 = por %p2081_p5, %p2080_p4 }
   0xd   :  { %p2083_p7 = pnand %p2082_p6, %p2076_p3 }
   0xf   :  { %2086 = shalt.err (!%p2083_p7)
}
  0x10   :  { %s2104_s11 = smov 640   ;;  %s2105_s12 = smov 40  }
  0x11   :  { %35 = dma.hbm_to_vmem [thread:$0]  %s2684_s4, 10240, %s30_s25, [#allocation4], %s2104_s11, %s2104_s11, %s2105_s12  }
  0x12   :  { %2099 = dma.done.wait [#allocation4], 10240  }
  0x13   :  { %2100 = vsyncadd [#allocation4], 4294957056  ;;  %v2106_v0 = vmov 0.0|0.0   ;;  %vm2107_vm0 = vmmov 0   ;;  %v2108_v1 = vmov 0.0   ;;  %v56_v2 = vld [vmem:[#allocation3] sm:$0xff] }
  0x14   :  { %1876 = vmatprep.subr.bf16.mxu0 %v2106_v0  ;;  %1598 = vmatprep.mubr.msk.f32.mxu0 %vm2107_vm0, %v2108_v1  ;;  %v57_v3 = vld [vmem:[#allocation3 + $0x28] sm:$0xff]  ;;  %v58_v4 = vld [vmem:[#allocation3 + $0x50] sm:$0xff]  ;;  %v59_v6 = vld [vmem:[#allocation3 + $0x78] sm:$0xff]  ;;  %vm286_vm1 = vcmask 326656   ;;  %vm968_vm8 = vcmask 7168   ;;  %s2109_s4 = smov 126  }
  0x15   :  { %1900 = vmatprep.subr.bf16.mxu1 %v2106_v0  ;;  %1645 = vmatprep.mubr.msk.f32.mxu1 %vm2107_vm0, %v2108_v1  ;;  %v1877_v5 = vpack.c.bf16 %v57_v3, %v56_v2  ;;  %v1880_v7 = vpack.c.bf16 %v59_v6, %v58_v4  ;;  %v60_v8 = vld [vmem:[#allocation3 + $0xa0] sm:$0xff]  ;;  %v61_v9 = vld [vmem:[#allocation3 + $0xc8] sm:$0xff]  ;;  %v177_v12 = vld [vmem:[#allocation3 + $0x30] sm:$0xff]  ;;  %s2110_s18 = smov 127   ;;  %s1394_s29 = sshll.u32 %s2687_s7, 4  ;;  %s1395_s29 = int_to_ptr.vmem [resolvable:$true] %s1394_s29 }
  0x16   :  { %v1883_v10 = vpack.c.bf16 %v61_v9, %v60_v8  ;;  %v176_v11 = vld [vmem:[#allocation3 + $0x8] sm:$0xff]  ;;  %v178_v13 = vld [vmem:[#allocation3 + $0x58] sm:$0xff]  ;;  %v62_v14 = vld [vmem:[#allocation3 + $0xf0] sm:$0xff]  ;;  %s2087_s8 = scalar_lea.vmem %s1395_s29, 16  ;;  %p2092_p9 = scmp.lt.s32.totalorder %s1395_s29, %s1395_s29 }
  0x17   :  { %1878 = vmatpush3.bf16.msra.mxu0 %v1877_v5  ;;  %v63_v15 = vld [vmem:[#allocation3 + $0x118] sm:$0xff]  ;;  %v1901_v16 = vpack.c.bf16 %v177_v12, %v176_v11  ;;  %v179_v17 = vld [vmem:[#allocation3 + $0x80] sm:$0xff]  ;;  %v180_v20 = vld [vmem:[#allocation3 + $0xa8] sm:$0xff]  ;;  %p2088_p8 = scmp.ne.s32.totalorder %s1395_s29, %s2087_s8  ;;  %p2093_p10 = scmp.lt.s32.totalorder %s2087_s8, %s2087_s8 }
  0x18   :  { %1879 = vmatprep.subr.bf16.mxu0 %v2106_v0  ;;  %v1904_v18 = vpack.c.bf16 %v179_v17, %v178_v13  ;;  %v1886_v19 = vpack.c.bf16 %v63_v15, %v62_v14  ;;  %v181_v21 = vld [vmem:[#allocation3 + $0xd0] sm:$0xff]  ;;  %v64_v22 = vld [vmem:[#allocation3 + $0x140] sm:$0xff]  ;;  %v65_v23 = vld [vmem:[#allocation3 + $0x168] sm:$0xff] }
  0x19   :  { %1902 = vmatpush3.bf16.msra.mxu1 %v1901_v16  ;;  %v1907_v24 = vpack.c.bf16 %v181_v21, %v180_v20  ;;  %v1889_v25 = vpack.c.bf16 %v65_v23, %v64_v22  ;;  %v182_v26 = vld [vmem:[#allocation3 + $0xf8] sm:$0xff]  ;;  %v183_v27 = vld [vmem:[#allocation3 + $0x120] sm:$0xff]  ;;  %v66_v28 = vld [vmem:[#allocation3 + $0x190] sm:$0xff]  ;;  %p2094_p11 = por %p2093_p10, %p2092_p9 }
  0x1a   :  { %1903 = vmatprep.subr.bf16.mxu1 %v2106_v0  ;;  %v67_v29 = vld [vmem:[#allocation3 + $0x1b8] sm:$0xff]  ;;  %v1910_v30 = vpack.c.bf16 %v183_v27, %v182_v26  ;;  %v184_v32 = vld [vmem:[#allocation3 + $0x148] sm:$0xff]  ;;  %v185_v33 = vld [vmem:[#allocation3 + $0x170] sm:$0xff] }
  0x1b   :  { %1881 = vmatpush3.bf16.msra.mxu0 %v1880_v7  ;;  %v1892_v31 = vpack.c.bf16 %v67_v29, %v66_v28  ;;  %v68_v34 = vld [vmem:[#allocation3 + $0x1e0] sm:$0xff]  ;;  %v69_v35 = vld [vmem:[#allocation3 + $0x208] sm:$0xff]  ;;  %v1913_v36 = vpack.c.bf16 %v185_v33, %v184_v32  ;;  %v186_v38 = vld [vmem:[#allocation3 + $0x198] sm:$0xff]  ;;  %p2095_p12 = pnand %p2094_p11, %p2088_p8 }
  0x1c   :  { %1882 = vmatprep.subr.bf16.mxu0 %v2106_v0  ;;  %v1895_v37 = vpack.c.bf16 %v69_v35, %v68_v34  ;;  %v187_v39 = vld [vmem:[#allocation3 + $0x1c0] sm:$0xff]  ;;  %v70_v40 = vld [vmem:[#allocation3 + $0x230] sm:$0xff]  ;;  %v71_v41 = vld [vmem:[#allocation3 + $0x258] sm:$0xff] }
  0x1d   :  { %1905 = vmatpush3.bf16.msra.mxu1 %v1904_v18  ;;  %v1916_v42 = vpack.c.bf16 %v187_v39, %v186_v38  ;;  %v1898_v43 = vpack.c.bf16 %v71_v41, %v70_v40  ;;  %v41_v44 = vld [vmem:[%s2681_s1] sm:$0xff]  ;;  %v42_v45 = vld [vmem:[%s2681_s1 + $0x8] sm:$0xff]  ;;  %v43_v46 = vld [vmem:[%s2681_s1 + $0x10] sm:$0xff] }
  0x1e   :  { %1906 = vmatprep.subr.bf16.mxu1 %v2106_v0  ;;  %v44_v47 = vld [vmem:[%s2681_s1 + $0x18] sm:$0xff]  ;;  %v45_v48 = vld [vmem:[%s2681_s1 + $0x20] sm:$0xff]  ;;  %v188_v49 = vld [vmem:[#allocation3 + $0x1e8] sm:$0xff] }
  0x1f   :  { %1884 = vmatpush3.bf16.msra.mxu0 %v1883_v10  ;;  %v189_v50 = vld [vmem:[#allocation3 + $0x210] sm:$0xff]  ;;  %v190_v52 = vld [vmem:[#allocation3 + $0x238] sm:$0xff]  ;;  %v191_v53 = vld [vmem:[#allocation3 + $0x260] sm:$0xff] }
  0x20   :  { %1885 = vmatprep.subr.bf16.mxu0 %v2106_v0  ;;  %v1919_v51 = vpack.c.bf16 %v189_v50, %v188_v49  ;;  %v1922_v54 = vpack.c.bf16 %v191_v53, %v190_v52  ;;  %v1406_v55 = vld [vmem:[%s2685_s5] ss:$0 sm:$0xff]  ;;  %v402_v29 = vld [vmem:[#allocation3 + $0x10] sm:$0xff]  ;;  %v407_v40 = vld [vmem:[#allocation3 + $0xd8] sm:$0xff] }
  0x21   :  { %1908 = vmatpush3.bf16.msra.mxu1 %v1907_v24  ;;  %v2229_v33 = vld [vmem:[%s2682_s2] sm:$0xff]  ;;  %v406_v39 = vld [vmem:[#allocation3 + $0xb0] sm:$0xff]  ;;  %v413_v52 = vld [vmem:[#allocation3 + $0x1c8] sm:$0xff] }
  0x22   :  { %1909 = vmatprep.subr.bf16.mxu1 %v2106_v0  ;;  %v404_v35 = vld [vmem:[#allocation3 + $0x60] sm:$0xff]  ;;  %v2249_v41 = vld [vmem:[%s2682_s2 + $0x10] sm:$0xff] }
  0x23   :  { %1887 = vmatpush3.bf16.msra.mxu0 %v1886_v19  ;;  %v2269_v49 = vld [vmem:[%s2682_s2 + $0x20] sm:$0xff] }
  0x24   :  { %1888 = vmatprep.subr.bf16.mxu0 %v2106_v0 }
  0x25   :  { %1911 = vmatpush3.bf16.msra.mxu1 %v1910_v30  ;;  %v403_v30 = vld [vmem:[#allocation3 + $0x38] sm:$0xff] }
  0x26   :  { %1912 = vmatprep.subr.bf16.mxu1 %v2106_v0  ;;  %v1931_v34 = vpack.c.bf16 %v403_v30, %v402_v29  ;;  %v616_v30 = vld [vmem:[#allocation3 + $0xb8] sm:$0xff] }
  0x27   :  { %1890 = vmatpush3.bf16.msra.mxu0 %v1889_v25 }
  0x28   :  { %1891 = vmatprep.subr.bf16.mxu0 %v2106_v0 }
  0x29   :  { %1914 = vmatpush3.bf16.msra.mxu1 %v1913_v36  ;;  %v405_v36 = vld [vmem:[#allocation3 + $0x88] sm:$0xff] }
  0x2a   :  { %1915 = vmatprep.subr.bf16.mxu1 %v2106_v0  ;;  %v1934_v38 = vpack.c.bf16 %v405_v36, %v404_v35  ;;  %v619_v35 = vld [vmem:[#allocation3 + $0x130] sm:$0xff] }
  0x2b   :  { %1893 = vmatpush3.bf16.msra.mxu0 %v1892_v31 }
  0x2c   :  { %1894 = vmatprep.subr.bf16.mxu0 %v2106_v0 }
  0x2d   :  { %1917 = vmatpush3.bf16.msra.mxu1 %v1916_v42  ;;  %v1937_v42 = vpack.c.bf16 %v407_v40, %v406_v39  ;;  %v621_v39 = vld [vmem:[#allocation3 + $0x180] sm:$0xff] }
  0x2e   :  { %1918 = vmatprep.subr.bf16.mxu1 %v2106_v0 }
  0x2f   :  { %1896 = vmatpush3.bf16.msra.mxu0 %v1895_v37  ;;  %v2239_v37 = vld [vmem:[%s2682_s2 + $0x8] sm:$0xff] }
  0x30   :  { %1897 = vmatprep.subr.bf16.mxu0 %v2106_v0 }
  0x31   :  { %1920 = vmatpush3.bf16.msra.mxu1 %v1919_v51  ;;  %v412_v51 = vld [vmem:[#allocation3 + $0x1a0] sm:$0xff] }
  0x32   :  { %1921 = vmatprep.subr.bf16.mxu1 %v2106_v0  ;;  %v1946_v53 = vpack.c.bf16 %v413_v52, %v412_v51 }
  0x33   :  { %1899 = vmatpush3.bf16.msra.mxu0 %v1898_v43  ;;  %v408_v43 = vld [vmem:[#allocation3 + $0x100] sm:$0xff] }
  0x34   :  { %1954 = vmatprep.subr.bf16.mxu0 %v2106_v0 }
  0x35   :  { %1923 = vmatpush3.bf16.msra.mxu1 %v1922_v54  ;;  %v414_v54 = vld [vmem:[#allocation3 + $0x1f0] sm:$0xff] }
  0x36   :  { %1599 = vmatmul.mubr.f32.vlgmr.msra.gmra.mrb[0].mxu0 %v41_v44  ;;  %1924 = vmatprep.subr.bf16.mxu1 %v2106_v0  ;;  %v409_v44 = vld [vmem:[#allocation3 + $0x128] sm:$0xff] }
  0x37   :  { %1601 = vmatprep.mubr.msk.f32.mxu0 %vm2107_vm0, %v2108_v1 }
  0x3a   :  { %1602 = vmatmul.mubr.f32.gmra.mrb[2].mxu0 %v42_v45  ;;  %v2259_v45 = vld [vmem:[%s2682_s2 + $0x18] sm:$0xff] }
  0x3b   :  { %1604 = vmatprep.mubr.msk.f32.mxu0 %vm2107_vm0, %v2108_v1 }
  0x3e   :  { %1605 = vmatmul.mubr.f32.gmra.mrb[4].mxu0 %v43_v46  ;;  %v1940_v46 = vpack.c.bf16 %v409_v44, %v408_v43  ;;  %v623_v43 = vld [vmem:[#allocation3 + $0x1d0] sm:$0xff] }
  0x3f   :  { %1607 = vmatprep.mubr.msk.f32.mxu0 %vm2107_vm0, %v2108_v1 }
  0x42   :  { %1608 = vmatmul.mubr.f32.gmra.mrb[6].mxu0 %v44_v47  ;;  %v410_v47 = vld [vmem:[#allocation3 + $0x150] sm:$0xff] }
  0x43   :  { %1610 = vmatprep.mubr.msk.f32.mxu0 %vm2107_vm0, %v2108_v1 }
  0x46   :  { %1611 = vmatmul.mubr.f32.gmra.mrb[8].mxu0 %v45_v48  ;;  %v411_v48 = vld [vmem:[#allocation3 + $0x178] sm:$0xff] }
  0x47   :  { %1742 = vmatprep.mubr.msk.f32.mxu0 %vm2107_vm0, %v2108_v1  ;;  %v1943_v50 = vpack.c.bf16 %v411_v48, %v410_v47 }
 0x109   :  { %v142_v56 = vpop.f32.mrb[0].mxu0 }
 0x10a   :  { %v143_v57 = vadd.f32 %v1406_v55, %v142_v56  ;;  %v1600_v58 = vpop.f32.mrb[1].mxu0 }
 0x10b   :  { %v417_v58 = vld [vmem:[#allocation3 + $0x268] sm:$0xff] }
 0x10c   :  { %v166_v59 = vmax.f32 %v143_v57, 0.0  ;;  %v416_v57 = vld [vmem:[#allocation3 + $0x240] sm:$0xff] }
 0x10d   :  { %v147_v60 = vpop.f32.mrb[2].mxu0 }
 0x10e   :  { %v171_v61 = vmin.f32 %v166_v59, 6.0  ;;  %v148_v62 = vadd.f32 %v1406_v55, %v147_v60  ;;  %v1603_v63 = vpop.f32.mrb[3].mxu0  ;;  %v1952_v59 = vpack.c.bf16 %v417_v58, %v416_v57  ;;  %v1407_v60 = vld [vmem:[%s2685_s5 + $0x1] ss:$0 sm:$0xff] }
 0x110   :  { %v167_v2 = vmax.f32 %v148_v62, 0.0  ;;  %1646 = vmatmul.mubr.f32.vlgmr.msra.gmra.mrb[0].mxu1 %v171_v61 }
 0x111   :  { %v152_v3 = vpop.f32.mrb[4].mxu0  ;;  %1648 = vmatprep.mubr.msk.f32.mxu1 %vm2107_vm0, %v2108_v1 }
 0x112   :  { %v172_v4 = vmin.f32 %v167_v2, 6.0  ;;  %v153_v5 = vadd.f32 %v1406_v55, %v152_v3  ;;  %v1606_v6 = vpop.f32.mrb[5].mxu0 }
 0x114   :  { %v168_v7 = vmax.f32 %v153_v5, 0.0  ;;  %1649 = vmatmul.mubr.f32.gmra.mrb[2].mxu1 %v172_v4 }
 0x115   :  { %v157_v8 = vpop.f32.mrb[6].mxu0  ;;  %1651 = vmatprep.mubr.msk.f32.mxu1 %vm2107_vm0, %v2108_v1 }
 0x116   :  { %v173_v9 = vmin.f32 %v168_v7, 6.0  ;;  %v158_v10 = vadd.f32 %v1406_v55, %v157_v8  ;;  %v1609_v11 = vpop.f32.mrb[7].mxu0 }
 0x118   :  { %v169_v12 = vmax.f32 %v158_v10, 0.0  ;;  %1652 = vmatmul.mubr.f32.gmra.mrb[4].mxu1 %v173_v9 }
 0x119   :  { %v162_v13 = vpop.f32.mrb[8].mxu0  ;;  %1654 = vmatprep.mubr.msk.f32.mxu1 %vm2107_vm0, %v2108_v1 }
 0x11a   :  { %v174_v14 = vmin.f32 %v169_v12, 6.0  ;;  %v163_v15 = vadd.f32 %v1406_v55, %v162_v13  ;;  %v1612_v16 = vpop.f32.mrb[9].mxu0  ;;  %v415_v55 = vld [vmem:[#allocation3 + $0x218] sm:$0xff] }
 0x11b   :  { %v1949_v56 = vpack.c.bf16 %v415_v55, %v414_v54 }
 0x11c   :  { %v170_v17 = vmax.f32 %v163_v15, 0.0  ;;  %1655 = vmatmul.mubr.f32.gmra.mrb[6].mxu1 %v174_v14 }
 0x11d   :  { %1657 = vmatprep.mubr.msk.f32.mxu1 %vm2107_vm0, %v2108_v1 }
 0x11e   :  { %v175_v18 = vmin.f32 %v170_v17, 6.0 }
 0x120   :  { %1658 = vmatmul.mubr.f32.gmra.mrb[8].mxu1 %v175_v18 }
 0x121   :  { %1670 = vmatprep.mubr.msk.f32.mxu1 %vm2107_vm0, %v2108_v1 }
 0x1e3   :  { %v258_v19 = vpop.f32.mrb[0].mxu1 }
 0x1e4   :  { %v1647_v20 = vpop.f32.mrb[1].mxu1 }
 0x1e7   :  { %v263_v21 = vpop.f32.mrb[2].mxu1 }
 0x1e8   :  { %v1925_v22 = vpack.c.bf16 %v263_v21, %v258_v19  ;;  %v1650_v23 = vpop.f32.mrb[3].mxu1 }
 0x1ea   :  { %1926 = vmatpush3.bf16.msra.mxu1 %v1925_v22 }
 0x1eb   :  { %v268_v24 = vpop.f32.mrb[4].mxu1  ;;  %1927 = vmatprep.subr.bf16.mxu1 %v2106_v0 }
 0x1ec   :  { %v1653_v25 = vpop.f32.mrb[5].mxu1 }
 0x1ed   :  { %v613_v25 = vld [vmem:[#allocation3 + $0x40] sm:$0xff] }
 0x1ef   :  { %v273_v26 = vpop.f32.mrb[6].mxu1 }
 0x1f0   :  { %v1928_v27 = vpack.c.bf16 %v273_v26, %v268_v24  ;;  %v1656_v28 = vpop.f32.mrb[7].mxu1  ;;  %v612_v24 = vld [vmem:[#allocation3 + $0x18] sm:$0xff]  ;;  %v614_v26 = vld [vmem:[#allocation3 + $0x68] sm:$0xff] }
 0x1f1   :  { %v615_v28 = vld [vmem:[#allocation3 + $0x90] sm:$0xff] }
 0x1f2   :  { %1929 = vmatpush3.bf16.msra.mxu1 %v1928_v27  ;;  %v1961_v27 = vpack.c.bf16 %v613_v25, %v612_v24  ;;  %v1964_v29 = vpack.c.bf16 %v615_v28, %v614_v26 }
 0x1f3   :  { %v278_v31 = vpop.f32.mrb[8].mxu1  ;;  %1668 = vmatprep.subr.mxu1 %v2108_v1 }
 0x1f4   :  { %v1659_v32 = vpop.f32.mrb[9].mxu1 }
 0x1f6   :  { %1669 = vmatpush3.msra.mxu1 %v278_v31  ;;  %v617_v31 = vld [vmem:[#allocation3 + $0xe0] sm:$0xff] }
 0x1f7   :  { %1671 = vmatmul.mubr.msk.f32.vlgmr.msra.gmra.mrb[10].mxu1 %vm286_vm1, %v2229_v33  ;;  %1930 = vmatprep.subr.bf16.mxu1 %v2106_v0  ;;  %v1967_v32 = vpack.c.bf16 %v617_v31, %v616_v30 }
 0x1f8   :  { %1673 = vmatprep.mubr.msk.f32.mxu1 %vm2107_vm0, %v2108_v1  ;;  %1932 = vmatpush3.bf16.msra.mxu1 %v1931_v34  ;;  %v618_v34 = vld [vmem:[#allocation3 + $0x108] sm:$0xff] }
 0x1f9   :  { %1933 = vmatprep.subr.bf16.mxu1 %v2106_v0  ;;  %v1970_v36 = vpack.c.bf16 %v619_v35, %v618_v34 }
 0x1fb   :  { %1674 = vmatmul.mubr.msk.f32.gmra.mrb[12].mxu1 %vm286_vm1, %v2239_v37 }
 0x1fc   :  { %1676 = vmatprep.mubr.msk.f32.mxu1 %vm2107_vm0, %v2108_v1  ;;  %1935 = vmatpush3.bf16.msra.mxu1 %v1934_v38  ;;  %v620_v38 = vld [vmem:[#allocation3 + $0x158] sm:$0xff] }
 0x1fd   :  { %1936 = vmatprep.subr.bf16.mxu1 %v2106_v0  ;;  %v1973_v40 = vpack.c.bf16 %v621_v39, %v620_v38 }
 0x1ff   :  { %1677 = vmatmul.mubr.msk.f32.gmra.mrb[14].mxu1 %vm286_vm1, %v2249_v41 }
 0x200   :  { %1679 = vmatprep.mubr.msk.f32.mxu1 %vm2107_vm0, %v2108_v1  ;;  %1938 = vmatpush3.bf16.msra.mxu1 %v1937_v42  ;;  %v622_v42 = vld [vmem:[#allocation3 + $0x1a8] sm:$0xff] }
 0x201   :  { %1939 = vmatprep.subr.bf16.mxu1 %v2106_v0  ;;  %v1976_v44 = vpack.c.bf16 %v623_v43, %v622_v42  ;;  %v822_v42 = vld [vmem:[#allocation3 + $0x20] sm:$0xff]  ;;  %v823_v43 = vld [vmem:[#allocation3 + $0x48] sm:$0xff] }
 0x203   :  { %1680 = vmatmul.mubr.msk.f32.gmra.mrb[16].mxu1 %vm286_vm1, %v2259_v45 }
 0x204   :  { %1682 = vmatprep.mubr.msk.f32.mxu1 %vm2107_vm0, %v2108_v1  ;;  %1941 = vmatpush3.bf16.msra.mxu1 %v1940_v46 }
 0x205   :  { %1942 = vmatprep.subr.bf16.mxu1 %v2106_v0 }
 0x207   :  { %1683 = vmatmul.mubr.msk.f32.gmra.mrb[18].mxu1 %vm286_vm1, %v2269_v49 }
 0x208   :  { %1944 = vmatpush3.bf16.msra.mxu1 %v1943_v50  ;;  %1717 = vmatprep.mubr.msk.f32.mxu1 %vm2107_vm0, %v2108_v1 }
 0x209   :  { %1945 = vmatprep.subr.bf16.mxu1 %v2106_v0 }
 0x20c   :  { %1947 = vmatpush3.bf16.msra.mxu1 %v1946_v53 }
 0x20d   :  { %1948 = vmatprep.subr.bf16.mxu1 %v2106_v0 }
 0x210   :  { %1950 = vmatpush3.bf16.msra.mxu1 %v1949_v56 }
 0x211   :  { %1951 = vmatprep.subr.bf16.mxu1 %v2106_v0 }
 0x214   :  { %1953 = vmatpush3.bf16.msra.mxu1 %v1952_v59  ;;  %v624_v59 = vld [vmem:[#allocation3 + $0x1f8] sm:$0xff] }
 0x215   :  { %1960 = vmatprep.subr.bf16.mxu1 %v2106_v0 }
 0x2ca   :  { %v368_v61 = vpop.f32.mrb[10].mxu1 }
 0x2cb   :  { %v369_v62 = vadd.f32 %v1407_v60, %v368_v61  ;;  %v1672_v63 = vpop.f32.mrb[11].mxu1 }
 0x2cc   :  { %v627_v63 = vld [vmem:[#allocation3 + $0x270] sm:$0xff] }
 0x2cd   :  { %v392_v2 = vmax.f32 %v369_v62, 0.0  ;;  %v626_v62 = vld [vmem:[#allocation3 + $0x248] sm:$0xff] }
 0x2ce   :  { %v373_v3 = vpop.f32.mrb[12].mxu1 }
 0x2cf   :  { %v397_v4 = vmin.f32 %v392_v2, 6.0  ;;  %v374_v5 = vadd.f32 %v1407_v60, %v373_v3  ;;  %v1675_v6 = vpop.f32.mrb[13].mxu1  ;;  %v1982_v2 = vpack.c.bf16 %v627_v63, %v626_v62  ;;  %v1413_v3 = vld [vmem:[%s2685_s5 + $0x2] ss:$0 sm:$0xff]  ;;  %v836_v63 = vld [vmem:[#allocation3 + $0x250] sm:$0xff] }
 0x2d1   :  { %v393_v7 = vmax.f32 %v374_v5, 0.0  ;;  %1718 = vmatmul.mubr.f32.vlgmr.msra.gmra.mrb[20].mxu1 %v397_v4 }
 0x2d2   :  { %v378_v8 = vpop.f32.mrb[14].mxu1  ;;  %1720 = vmatprep.mubr.msk.f32.mxu1 %vm2107_vm0, %v2108_v1  ;;  %1962 = vmatpush3.bf16.msra.mxu1 %v1961_v27 }
 0x2d3   :  { %v398_v9 = vmin.f32 %v393_v7, 6.0  ;;  %v379_v10 = vadd.f32 %v1407_v60, %v378_v8  ;;  %v1678_v11 = vpop.f32.mrb[15].mxu1  ;;  %1963 = vmatprep.subr.bf16.mxu1 %v2106_v0 }
 0x2d5   :  { %v394_v12 = vmax.f32 %v379_v10, 0.0  ;;  %1721 = vmatmul.mubr.f32.gmra.mrb[22].mxu1 %v398_v9 }
 0x2d6   :  { %v383_v13 = vpop.f32.mrb[16].mxu1  ;;  %1723 = vmatprep.mubr.msk.f32.mxu1 %vm2107_vm0, %v2108_v1  ;;  %1965 = vmatpush3.bf16.msra.mxu1 %v1964_v29 }
 0x2d7   :  { %v399_v14 = vmin.f32 %v394_v12, 6.0  ;;  %v384_v15 = vadd.f32 %v1407_v60, %v383_v13  ;;  %v1681_v16 = vpop.f32.mrb[17].mxu1  ;;  %1966 = vmatprep.subr.bf16.mxu1 %v2106_v0 }
 0x2d9   :  { %v395_v17 = vmax.f32 %v384_v15, 0.0  ;;  %1724 = vmatmul.mubr.f32.gmra.mrb[24].mxu1 %v399_v14 }
 0x2da   :  { %v388_v18 = vpop.f32.mrb[18].mxu1  ;;  %1726 = vmatprep.mubr.msk.f32.mxu1 %vm2107_vm0, %v2108_v1  ;;  %1968 = vmatpush3.bf16.msra.mxu1 %v1967_v32 }
 0x2db   :  { %v400_v19 = vmin.f32 %v395_v17, 6.0  ;;  %v389_v20 = vadd.f32 %v1407_v60, %v388_v18  ;;  %v1684_v21 = vpop.f32.mrb[19].mxu1  ;;  %1969 = vmatprep.subr.bf16.mxu1 %v2106_v0  ;;  %v625_v60 = vld [vmem:[#allocation3 + $0x220] sm:$0xff] }
 0x2dc   :  { %v1979_v61 = vpack.c.bf16 %v625_v60, %v624_v59  ;;  %v833_v59 = vld [vmem:[#allocation3 + $0x1d8] sm:$0xff] }
 0x2dd   :  { %v396_v22 = vmax.f32 %v389_v20, 0.0  ;;  %1727 = vmatmul.mubr.f32.gmra.mrb[26].mxu1 %v400_v19 }
 0x2de   :  { %1729 = vmatprep.mubr.msk.f32.mxu1 %vm2107_vm0, %v2108_v1  ;;  %1971 = vmatpush3.bf16.msra.mxu1 %v1970_v36 }
 0x2df   :  { %v401_v23 = vmin.f32 %v396_v22, 6.0  ;;  %1972 = vmatprep.subr.bf16.mxu1 %v2106_v0 }
 0x2e1   :  { %1730 = vmatmul.mubr.f32.gmra.mrb[28].mxu1 %v401_v23 }
 0x2e2   :  { %1789 = vmatprep.mubr.msk.f32.mxu1 %vm2107_vm0, %v2108_v1  ;;  %1974 = vmatpush3.bf16.msra.mxu1 %v1973_v40 }
 0x2e3   :  { %1975 = vmatprep.subr.bf16.mxu1 %v2106_v0 }
 0x2e6   :  { %1977 = vmatpush3.bf16.msra.mxu1 %v1976_v44 }
 0x2e7   :  { %1978 = vmatprep.subr.bf16.mxu1 %v2106_v0 }
 0x2ea   :  { %1980 = vmatpush3.bf16.msra.mxu1 %v1979_v61  ;;  %v835_v61 = vld [vmem:[#allocation3 + $0x228] sm:$0xff] }
 0x2eb   :  { %1981 = vmatprep.subr.bf16.mxu1 %v2106_v0 }
 0x2ee   :  { %1983 = vmatpush3.bf16.msra.mxu1 %v1982_v2  ;;  %v837_v2 = vld [vmem:[#allocation3 + $0x278] sm:$0xff] }
 0x3a4   :  { %v484_v46 = vpop.f32.mrb[20].mxu1 }
 0x3a5   :  { %v1719_v47 = vpop.f32.mrb[21].mxu1 }
 0x3a6   :  { %v1991_v47 = vpack.c.bf16 %v823_v43, %v822_v42  ;;  %v2398_v42 = vld [vmem:[%s2683_s3 + $0x18] sm:$0xff] }
 0x3a7   :  { %vm956_vm3 = vcmp.gt.f32.partialorder %v2398_v42, 0.5 }
 0x3a8   :  { %v489_v48 = vpop.f32.mrb[22].mxu1 }
 0x3a9   :  { %v1955_v50 = vpack.c.bf16 %v489_v48, %v484_v46  ;;  %v1722_v51 = vpop.f32.mrb[23].mxu1  ;;  %v824_v48 = vld [vmem:[#allocation3 + $0x70] sm:$0xff] }
 0x3ab   :  { %1956 = vmatpush3.bf16.msra.mxu0 %v1955_v50  ;;  %v825_v50 = vld [vmem:[#allocation3 + $0x98] sm:$0xff] }
 0x3ac   :  { %v494_v52 = vpop.f32.mrb[24].mxu1  ;;  %1957 = vmatprep.subr.bf16.mxu0 %v2106_v0  ;;  %v1994_v51 = vpack.c.bf16 %v825_v50, %v824_v48  ;;  %v2415_v50 = vld [vmem:[%s2683_s3 + $0x8] sm:$0xff] }
 0x3ad   :  { %v1725_v53 = vpop.f32.mrb[25].mxu1  ;;  %vm954_vm6 = vcmp.gt.f32.partialorder %v2415_v50, 0.5 }
 0x3ae   :  { %v827_v53 = vld [vmem:[#allocation3 + $0xe8] sm:$0xff] }
 0x3b0   :  { %v499_v54 = vpop.f32.mrb[26].mxu1 }
 0x3b1   :  { %v1958_v55 = vpack.c.bf16 %v499_v54, %v494_v52  ;;  %v1728_v56 = vpop.f32.mrb[27].mxu1  ;;  %v826_v52 = vld [vmem:[#allocation3 + $0xc0] sm:$0xff] }
 0x3b2   :  { %v1997_v54 = vpack.c.bf16 %v827_v53, %v826_v52 }
 0x3b3   :  { %1959 = vmatpush3.bf16.msra.mxu0 %v1958_v55  ;;  %v829_v55 = vld [vmem:[#allocation3 + $0x138] sm:$0xff] }
 0x3b4   :  { %v504_v57 = vpop.f32.mrb[28].mxu1  ;;  %1740 = vmatprep.subr.mxu0 %v2108_v1 }
 0x3b5   :  { %v1731_v58 = vpop.f32.mrb[29].mxu1 }
 0x3b7   :  { %1741 = vmatpush3.msra.mxu0 %v504_v57  ;;  %v831_v57 = vld [vmem:[#allocation3 + $0x188] sm:$0xff] }
 0x3b8   :  { %1743 = vmatmul.mubr.msk.f32.vlgmr.msra.gmra.mrb[10].mxu0 %vm286_vm1, %v2229_v33  ;;  %1984 = vmatprep.subr.bf16.mxu0 %v2106_v0 }
 0x3b9   :  { %1745 = vmatprep.mubr.msk.f32.mxu0 %vm2107_vm0, %v2108_v1 }
 0x3bc   :  { %1746 = vmatmul.mubr.msk.f32.gmra.mrb[12].mxu0 %vm286_vm1, %v2239_v37 }
 0x3bd   :  { %1748 = vmatprep.mubr.msk.f32.mxu0 %vm2107_vm0, %v2108_v1 }
 0x3c0   :  { %1749 = vmatmul.mubr.msk.f32.gmra.mrb[14].mxu0 %vm286_vm1, %v2249_v41 }
 0x3c1   :  { %1751 = vmatprep.mubr.msk.f32.mxu0 %vm2107_vm0, %v2108_v1 }
 0x3c4   :  { %1752 = vmatmul.mubr.msk.f32.gmra.mrb[16].mxu0 %vm286_vm1, %v2259_v45 }
 0x3c5   :  { %1754 = vmatprep.mubr.msk.f32.mxu0 %vm2107_vm0, %v2108_v1 }
 0x3c8   :  { %1755 = vmatmul.mubr.msk.f32.gmra.mrb[18].mxu0 %vm286_vm1, %v2269_v49 }
 0x3c9   :  { %1814 = vmatprep.mubr.msk.f32.mxu0 %vm2107_vm0, %v2108_v1 }
 0x48b   :  { %v578_v4 = vpop.f32.mrb[10].mxu0 }
 0x48c   :  { %v579_v5 = vadd.f32 %v1413_v3, %v578_v4  ;;  %v1744_v6 = vpop.f32.mrb[11].mxu0 }
 0x48e   :  { %v602_v7 = vmax.f32 %v579_v5, 0.0 }
 0x48f   :  { %v583_v8 = vpop.f32.mrb[12].mxu0 }
 0x490   :  { %v607_v9 = vmin.f32 %v602_v7, 6.0  ;;  %v584_v10 = vadd.f32 %v1413_v3, %v583_v8  ;;  %v1747_v11 = vpop.f32.mrb[13].mxu0 }
 0x492   :  { %v603_v12 = vmax.f32 %v584_v10, 0.0  ;;  %1790 = vmatmul.mubr.f32.vlgmr.msra.gmra.mrb[30].mxu1 %v607_v9 }
 0x493   :  { %v588_v13 = vpop.f32.mrb[14].mxu0  ;;  %1792 = vmatprep.mubr.msk.f32.mxu1 %vm2107_vm0, %v2108_v1 }
 0x494   :  { %v608_v14 = vmin.f32 %v603_v12, 6.0  ;;  %v589_v15 = vadd.f32 %v1413_v3, %v588_v13  ;;  %v1750_v16 = vpop.f32.mrb[15].mxu0 }
 0x496   :  { %v604_v17 = vmax.f32 %v589_v15, 0.0  ;;  %1793 = vmatmul.mubr.f32.gmra.mrb[32].mxu1 %v608_v14 }
 0x497   :  { %v593_v18 = vpop.f32.mrb[16].mxu0  ;;  %1795 = vmatprep.mubr.msk.f32.mxu1 %vm2107_vm0, %v2108_v1 }
 0x498   :  { %v609_v19 = vmin.f32 %v604_v17, 6.0  ;;  %v594_v20 = vadd.f32 %v1413_v3, %v593_v18  ;;  %v1753_v21 = vpop.f32.mrb[17].mxu0 }
 0x49a   :  { %v605_v22 = vmax.f32 %v594_v20, 0.0  ;;  %1796 = vmatmul.mubr.f32.gmra.mrb[34].mxu1 %v609_v19 }
 0x49b   :  { %v598_v23 = vpop.f32.mrb[18].mxu0  ;;  %1798 = vmatprep.mubr.msk.f32.mxu1 %vm2107_vm0, %v2108_v1 }
 0x49c   :  { %v610_v24 = vmin.f32 %v605_v22, 6.0  ;;  %v599_v25 = vadd.f32 %v1413_v3, %v598_v23  ;;  %v1756_v26 = vpop.f32.mrb[19].mxu0  ;;  %v2012_v3 = vpack.c.bf16 %v837_v2, %v836_v63 }
 0x49e   :  { %v606_v27 = vmax.f32 %v599_v25, 0.0  ;;  %1799 = vmatmul.mubr.f32.gmra.mrb[36].mxu1 %v610_v24 }
 0x49f   :  { %1801 = vmatprep.mubr.msk.f32.mxu1 %vm2107_vm0, %v2108_v1 }
 0x4a0   :  { %v611_v28 = vmin.f32 %v606_v27, 6.0 }
 0x4a2   :  { %1802 = vmatmul.mubr.f32.gmra.mrb[38].mxu1 %v611_v28 }
 0x565   :  { %v694_v29 = vpop.f32.mrb[30].mxu1 }
 0x566   :  { %v1791_v30 = vpop.f32.mrb[31].mxu1 }
 0x569   :  { %v699_v31 = vpop.f32.mrb[32].mxu1 }
 0x56a   :  { %v1985_v32 = vpack.c.bf16 %v699_v31, %v694_v29  ;;  %v1794_v34 = vpop.f32.mrb[33].mxu1 }
 0x56c   :  { %1986 = vmatpush3.bf16.msra.mxu0 %v1985_v32  ;;  %v928_v32 = vlaneseq }
 0x56d   :  { %v704_v35 = vpop.f32.mrb[34].mxu1  ;;  %1987 = vmatprep.subr.bf16.mxu0 %v2106_v0 }
 0x56e   :  { %v1797_v36 = vpop.f32.mrb[35].mxu1 }
 0x56f   :  { %v2381_v36 = vshrl.u32 %v928_v32, 7 }
 0x571   :  { %v709_v38 = vpop.f32.mrb[36].mxu1 }
 0x572   :  { %v1988_v39 = vpack.c.bf16 %v709_v38, %v704_v35  ;;  %v1800_v40 = vpop.f32.mrb[37].mxu1  ;;  %v2386_v38 = vld [vmem:[%s2685_s5 + $0x4] ss:$0 sm:$0xff] }
 0x574   :  { %1989 = vmatpush3.bf16.msra.mxu0 %v1988_v39  ;;  %v2391_v39 = vld [vmem:[%s2683_s3] sm:$0xff] }
 0x575   :  { %v714_v44 = vpop.f32.mrb[38].mxu1  ;;  %1812 = vmatprep.subr.mxu0 %v2108_v1  ;;  %vm953_vm2 = vcmp.gt.f32.partialorder %v2391_v39, 0.5 }
 0x576   :  { %v1803_v46 = vpop.f32.mrb[39].mxu1 }
 0x577   :  { %v2406_v46 = vadd.s32 32, %v2381_v36 }
 0x578   :  { %1813 = vmatpush3.msra.mxu0 %v714_v44  ;;  %v2403_v44 = vld [vmem:[%s2683_s3 + $0x20] sm:$0xff] }
 0x579   :  { %1815 = vmatmul.mubr.msk.f32.vlgmr.msra.gmra.mrb[20].mxu0 %vm286_vm1, %v2229_v33  ;;  %1990 = vmatprep.subr.bf16.mxu0 %v2106_v0  ;;  %v828_v33 = vld [vmem:[#allocation3 + $0x110] sm:$0xff]  ;;  %vm957_vm4 = vcmp.gt.f32.partialorder %v2403_v44, 0.5  ;;  %vm938_vm5 = vcmp.lt.s32.totalorder %v2406_v46, 35 }
 0x57a   :  { %1817 = vmatprep.mubr.msk.f32.mxu0 %vm2107_vm0, %v2108_v1  ;;  %1992 = vmatpush3.bf16.msra.mxu0 %v1991_v47  ;;  %v2000_v56 = vpack.c.bf16 %v829_v55, %v828_v33 }
 0x57b   :  { %1993 = vmatprep.subr.bf16.mxu0 %v2106_v0 }
 0x57d   :  { %1818 = vmatmul.mubr.msk.f32.gmra.mrb[22].mxu0 %vm286_vm1, %v2239_v37  ;;  %v830_v37 = vld [vmem:[#allocation3 + $0x160] sm:$0xff] }
 0x57e   :  { %1820 = vmatprep.mubr.msk.f32.mxu0 %vm2107_vm0, %v2108_v1  ;;  %1995 = vmatpush3.bf16.msra.mxu0 %v1994_v51  ;;  %v2003_v58 = vpack.c.bf16 %v831_v57, %v830_v37  ;;  %v2420_v51 = vld [vmem:[%s2683_s3 + $0x10] sm:$0xff] }
 0x57f   :  { %1996 = vmatprep.subr.bf16.mxu0 %v2106_v0  ;;  %vm955_vm7 = vcmp.gt.f32.partialorder %v2420_v51, 0.5 }
 0x581   :  { %1821 = vmatmul.mubr.msk.f32.gmra.mrb[24].mxu0 %vm286_vm1, %v2249_v41  ;;  %v832_v41 = vld [vmem:[#allocation3 + $0x1b0] sm:$0xff] }
 0x582   :  { %1823 = vmatprep.mubr.msk.f32.mxu0 %vm2107_vm0, %v2108_v1  ;;  %1998 = vmatpush3.bf16.msra.mxu0 %v1997_v54  ;;  %v2006_v60 = vpack.c.bf16 %v833_v59, %v832_v41 }
 0x583   :  { %1999 = vmatprep.subr.bf16.mxu0 %v2106_v0 }
 0x585   :  { %1824 = vmatmul.mubr.msk.f32.gmra.mrb[26].mxu0 %vm286_vm1, %v2259_v45  ;;  %v834_v45 = vld [vmem:[#allocation3 + $0x200] sm:$0xff] }
 0x586   :  { %1826 = vmatprep.mubr.msk.f32.mxu0 %vm2107_vm0, %v2108_v1  ;;  %2001 = vmatpush3.bf16.msra.mxu0 %v2000_v56  ;;  %v2009_v62 = vpack.c.bf16 %v835_v61, %v834_v45 }
 0x587   :  { %2002 = vmatprep.subr.bf16.mxu0 %v2106_v0 }
 0x589   :  { %1827 = vmatmul.mubr.msk.f32.gmra.mrb[28].mxu0 %vm286_vm1, %v2269_v49  ;;  %v1419_v49 = vld [vmem:[%s2685_s5 + $0x3] ss:$0 sm:$0xff] }
 0x58a   :  { %2004 = vmatpush3.bf16.msra.mxu0 %v2003_v58  ;;  %1861 = vmatprep.mubr.msk.f32.mxu0 %vm2107_vm0, %v2108_v1 }
 0x58b   :  { %2005 = vmatprep.subr.bf16.mxu0 %v2106_v0 }
 0x58e   :  { %2007 = vmatpush3.bf16.msra.mxu0 %v2006_v60 }
 0x58f   :  { %2008 = vmatprep.subr.bf16.mxu0 %v2106_v0 }
 0x592   :  { %2010 = vmatpush3.bf16.msra.mxu0 %v2009_v62 }
 0x593   :  { %2011 = vmatprep.subr.bf16.mxu0 %v2106_v0 }
 0x596   :  { %2013 = vmatpush3.bf16.msra.mxu0 %v2012_v3 }
 0x64c   :  { %v788_v4 = vpop.f32.mrb[20].mxu0 }
 0x64d   :  { %v789_v5 = vadd.f32 %v1419_v49, %v788_v4  ;;  %v1816_v6 = vpop.f32.mrb[21].mxu0 }
 0x64f   :  { %v812_v7 = vmax.f32 %v789_v5, 0.0 }
 0x650   :  { %v793_v8 = vpop.f32.mrb[22].mxu0 }
 0x651   :  { %v817_v9 = vmin.f32 %v812_v7, 6.0  ;;  %v794_v10 = vadd.f32 %v1419_v49, %v793_v8  ;;  %v1819_v11 = vpop.f32.mrb[23].mxu0 }
 0x653   :  { %v813_v12 = vmax.f32 %v794_v10, 0.0  ;;  %1862 = vmatmul.mubr.f32.vlgmr.msra.gmra.mrb[30].mxu0 %v817_v9 }
 0x654   :  { %v798_v13 = vpop.f32.mrb[24].mxu0  ;;  %1864 = vmatprep.mubr.msk.f32.mxu0 %vm2107_vm0, %v2108_v1 }
 0x655   :  { %v818_v0 = vmin.f32 %v813_v12, 6.0  ;;  %v799_v14 = vadd.f32 %v1419_v49, %v798_v13  ;;  %v1822_v15 = vpop.f32.mrb[25].mxu0 }
 0x657   :  { %v814_v16 = vmax.f32 %v799_v14, 0.0  ;;  %1865 = vmatmul.mubr.f32.gmra.mrb[32].mxu0 %v818_v0 }
 0x658   :  { %v803_v17 = vpop.f32.mrb[26].mxu0  ;;  %1867 = vmatprep.mubr.msk.f32.mxu0 %vm2107_vm0, %v2108_v1 }
 0x659   :  { %v819_v18 = vmin.f32 %v814_v16, 6.0  ;;  %v804_v19 = vadd.f32 %v1419_v49, %v803_v17  ;;  %v1825_v20 = vpop.f32.mrb[27].mxu0 }
 0x65b   :  { %v815_v21 = vmax.f32 %v804_v19, 0.0  ;;  %1868 = vmatmul.mubr.f32.gmra.mrb[34].mxu0 %v819_v18 }
 0x65c   :  { %v808_v22 = vpop.f32.mrb[28].mxu0  ;;  %1870 = vmatprep.mubr.msk.f32.mxu0 %vm2107_vm0, %v2108_v1 }
 0x65d   :  { %v820_v23 = vmin.f32 %v815_v21, 6.0  ;;  %v809_v24 = vadd.f32 %v1419_v49, %v808_v22  ;;  %v1828_v25 = vpop.f32.mrb[29].mxu0 }
 0x65f   :  { %v816_v26 = vmax.f32 %v809_v24, 0.0  ;;  %1871 = vmatmul.mubr.f32.gmra.mrb[36].mxu0 %v820_v23 }
 0x660   :  { %1873 = vmatprep.mubr.msk.f32.mxu0 %vm2107_vm0, %v2108_v1 }
 0x661   :  { %v821_v27 = vmin.f32 %v816_v26, 6.0 }
 0x663   :  { %1874 = vmatmul.mubr.f32.gmra.mrb[38].mxu0 %v821_v27 }
 0x726   :  { %v2375_v28 = vpop.f32.mrb[30].mxu0 }
 0x727   :  { %v1863_v29 = vpop.f32.mrb[31].mxu0  ;;  %v943_v47 = vadd.f32 %v2386_v38, %v2375_v28 }
 0x729   :  { %v958_v56 = vsel %vm953_vm2, 0.0, %v943_v47 }
 0x72a   :  { %v2377_v30 = vpop.f32.mrb[32].mxu0  ;;  %v969_v60 = vsel %vm968_vm8, %v958_v56, -inf }
 0x72b   :  { %v1866_v31 = vpop.f32.mrb[33].mxu0  ;;  %v944_v52 = vadd.f32 %v2386_v38, %v2377_v30 }
 0x72d   :  { %v959_v58 = vsel %vm954_vm6, 0.0, %v944_v52 }
 0x72e   :  { %v2379_v34 = vpop.f32.mrb[34].mxu0  ;;  %v970_v63 = vsel %vm968_vm8, %v959_v58, -inf }
 0x72f   :  { %v1869_v35 = vpop.f32.mrb[35].mxu0  ;;  %v945_v53 = vadd.f32 %v2386_v38, %v2379_v34 }
 0x731   :  { %v960_v41 = vsel %vm955_vm7, 0.0, %v945_v53 }
 0x732   :  { %v2393_v40 = vpop.f32.mrb[36].mxu0  ;;  %v971_v2 = vsel %vm968_vm8, %v960_v41, -inf }
 0x733   :  { %v1872_v43 = vpop.f32.mrb[37].mxu0  ;;  %v946_v48 = vadd.f32 %v2386_v38, %v2393_v40 }
 0x735   :  { %v961_v37 = vsel %vm956_vm3, 0.0, %v946_v48 }
 0x736   :  { %v2428_v54 = vpop.f32.mrb[38].mxu0  ;;  %v972_v45 = vsel %vm968_vm8, %v961_v37, -inf }
 0x737   :  { %v947_v33 = vadd.f32 %v2386_v38, %v2428_v54  ;;  %v1875_v55 = vpop.f32.mrb[39].mxu0  ;;  %v976_v49 = vmax.f32 %v971_v2, %v972_v45 }
 0x739   :  { %v962_v57 = vsel %vm957_vm4, 0.0, %v947_v33 }
 0x73a   :  { %v967_v59 = vsel %vm938_vm5, %v962_v57, -inf }
 0x73b   :  { %v973_v61 = vsel %vm968_vm8, %v967_v59, -inf }
 0x73c   :  { %v974_v62 = vmax.f32 %v969_v60, %v973_v61 }
 0x73e   :  { %v975_v3 = vmax.f32 %v974_v62, %v970_v63 }
 0x740   :  { %v977_v4 = vmax.f32 %v975_v3, %v976_v49 }
 0x742   :  { %978 = vmax.xlane.f32.xlu0 %v977_v4 }
 0x7cf   :  { %v979_v5 = vpop.xlane.xlu0 %978 }
 0x7d0   :  { %v980_v6 = vrot.slane %v979_v5, 4 }
 0x7d2   :  { %v981_v7 = vmax.f32 %v979_v5, %v980_v6 }
 0x7d4   :  { %v982_v8 = vrot.slane %v981_v7, 2 }
 0x7d6   :  { %v983_v9 = vmax.f32 %v981_v7, %v982_v8 }
 0x7d8   :  { %v984_v10 = vrot.slane %v983_v9, 1 }
 0x7da   :  { %v985_v11 = vmax.f32 %v983_v9, %v984_v10 }
 0x7dc   :  { %2014 = vpush %v985_v11 }
 0x80d   :  { %s2015_s3 = spop %2014 }
 0x80e   :  { %v987_v12 = vstv %s2015_s3 }
 0x80f   :  { %v988_v13 = vsub.f32 %v958_v56, %v987_v12  ;;  %v989_v0 = vsub.f32 %v959_v58, %v987_v12  ;;  %v990_v14 = vsub.f32 %v960_v41, %v987_v12  ;;  %v991_v15 = vsub.f32 %v961_v37, %v987_v12 }
 0x810   :  { %v992_v16 = vsub.f32 %v967_v59, %v987_v12 }
 0x811   :  { %v993_v17 = vmul.f32 1.442695, %v988_v13  ;;  %v995_v18 = vmul.f32 1.442695, %v989_v0  ;;  %v997_v19 = vmul.f32 1.442695, %v990_v14 }
 0x812   :  { %v999_v20 = vmul.f32 1.442695, %v991_v15  ;;  %v1001_v21 = vmul.f32 1.442695, %v992_v16 }
 0x813   :  { %2041 = vpow2.f32 %v993_v17 }
 0x814   :  { %2043 = vpow2.f32 %v995_v18  ;;  %v2498_v18 = vadd.s32 16, %v2381_v36 }
 0x815   :  { %2045 = vpow2.f32 %v997_v19  ;;  %v2501_v19 = vadd.s32 8, %v2381_v36 }
 0x816   :  { %2047 = vpow2.f32 %v999_v20  ;;  %v2504_v20 = vadd.s32 24, %v2381_v36 }
 0x817   :  { %2049 = vpow2.f32 %v1001_v21 }
 0x81d   :  { %v2042_v22 = vpop.eup %2041 }
 0x81e   :  { %v2044_v23 = vpop.eup %2043  ;;  %v1008_v24 = vsel %vm968_vm8, %v2042_v22, 0.0 }
 0x81f   :  { %v2046_v25 = vpop.eup %2045  ;;  %v1009_v26 = vsel %vm968_vm8, %v2044_v23, 0.0 }
 0x820   :  { %v2048_v27 = vpop.eup %2047  ;;  %v1010_v29 = vadd.f32 %v1009_v26, %v1008_v24  ;;  %v1011_v32 = vsel %vm968_vm8, %v2046_v25, 0.0 }
 0x821   :  { %v2050_v31 = vpop.eup %2049  ;;  %v1013_v47 = vsel %vm968_vm8, %v2048_v27, 0.0 }
 0x822   :  { %v1007_v35 = vsel %vm938_vm5, %v2050_v31, 0.0  ;;  %v1012_v43 = vadd.f32 %v1011_v32, %v1010_v29 }
 0x823   :  { %v1015_v52 = vsel %vm968_vm8, %v1007_v35, 0.0 }
 0x824   :  { %v1014_v48 = vadd.f32 %v1013_v47, %v1012_v43 }
 0x826   :  { %v1016_v53 = vadd.f32 %v1015_v52, %v1014_v48 }
 0x828   :  { %1017 = vadd.xlane.f32.xlu0 %v1016_v53 }
 0x8b5   :  { %v1018_v33 = vpop.xlane.xlu0 %1017 }
 0x8b6   :  { %v1019_v55 = vrot.slane %v1018_v33, 4 }
 0x8b8   :  { %v1020_v56 = vadd.f32 %v1019_v55, %v1018_v33 }
 0x8ba   :  { %v1021_v37 = vrot.slane %v1020_v56, 2 }
 0x8bc   :  { %v1022_v57 = vadd.f32 %v1021_v37, %v1020_v56 }
 0x8be   :  { %v1023_v58 = vrot.slane %v1022_v57, 1 }
 0x8c0   :  { %v1024_v41 = vadd.f32 %v1023_v58, %v1022_v57 }
 0x8c2   :  { %2016 = vpush %v1024_v41 }
 0x8f3   :  { %s2017_s26 = spop %2016 }
 0x8f4   :  { %v1026_v59 = vstv %s2017_s26 }
 0x8f5   :  { %2051 = vrcp.f32 %v1026_v59 }
 0x8ff   :  { %v2052_v60 = vpop.eup %2051 }
 0x900   :  { %v1028_v45 = vmul.f32 %v2052_v60, %v2042_v22  ;;  %v1029_v61 = vmul.f32 %v2052_v60, %v2044_v23  ;;  %v1030_v62 = vmul.f32 %v2052_v60, %v2046_v25  ;;  %v1031_v63 = vmul.f32 %v2052_v60, %v2048_v27 }
 0x901   :  { %v1032_v2 = vmul.f32 %v2052_v60, %v1007_v35 }
 0x902   :  { %v1033_v3 = vsel %vm953_vm2, -1.0, %v1028_v45  ;;  %v1035_v49 = vsel %vm955_vm7, -1.0, %v1030_v62  ;;  %v1036_v4 = vsel %vm956_vm3, -1.0, %v1031_v63  ;;  %1372 = vst.msk [vmem:[%s2686_s6] sm:$0xff] %vm968_vm8, %v1028_v45  ;;  %1373 = vst.msk [vmem:[%s2686_s6 + $0x8] sm:$0xff] %vm968_vm8, %v1029_v61  ;;  %v1034_v51 = vsel %vm954_vm6, -1.0, %v1029_v61 }
 0x903   :  { %1374 = vst.msk [vmem:[%s2686_s6 + $0x10] sm:$0xff] %vm968_vm8, %v1030_v62  ;;  %1375 = vst.msk [vmem:[%s2686_s6 + $0x18] sm:$0xff] %vm968_vm8, %v1031_v63  ;;  %v1037_v39 = vsel %vm957_vm4, -1.0, %v1032_v2  ;;  %v1043_v42 = vsel %vm968_vm8, %v1033_v3, -inf  ;;  %v1045_v6 = vsel %vm968_vm8, %v1035_v49, -inf  ;;  %v1046_v7 = vsel %vm968_vm8, %v1036_v4, -inf }
 0x904   :  { %1376 = vst.msk [vmem:[%s2686_s6 + $0x20] sm:$0xff] %vm968_vm8, %v1032_v2  ;;  %v1042_v5 = vsel %vm938_vm5, %v1037_v39, -2.0  ;;  %v1044_v9 = vsel %vm968_vm8, %v1034_v51, -inf  ;;  %v1050_v11 = vmax.f32 %v1045_v6, %v1046_v7 }
 0x905   :  { %v1047_v44 = vsel %vm968_vm8, %v1042_v5, -inf }
 0x906   :  { %v1048_v8 = vmax.f32 %v1043_v42, %v1047_v44 }
 0x908   :  { %v1049_v10 = vmax.f32 %v1048_v8, %v1044_v9 }
 0x90a   :  { %v1051_v12 = vmax.f32 %v1049_v10, %v1050_v11 }
 0x90c   :  { %1052 = vmax.xlane.f32.xlu1 %v1051_v12 }
 0x999   :  { %v1053_v13 = vpop.xlane.xlu1 %1052 }
 0x99a   :  { %v1054_v0 = vrot.slane %v1053_v13, 4 }
 0x99c   :  { %v1055_v50 = vmax.f32 %v1053_v13, %v1054_v0 }
 0x99e   :  { %v1056_v14 = vrot.slane %v1055_v50, 2 }
 0x9a0   :  { %v1057_v15 = vmax.f32 %v1055_v50, %v1056_v14 }
 0x9a2   :  { %v1058_v16 = vrot.slane %v1057_v15, 1 }
 0x9a4   :  { %v1059_v17 = vmax.f32 %v1057_v15, %v1058_v16 }
 0x9a6   :  { %2018 = vpush %v1059_v17 }
 0x9d7   :  { %s2019_s13 = spop %2018 }
 0x9d8   :  { %v1061_v21 = vstv %s2019_s13 }
 0x9d9   :  { %vm1062_vm9 = vcmp.eq.f32.partialorder %v1033_v3, %v1061_v21  ;;  %vm1063_vm10 = vcmp.eq.f32.partialorder %v1034_v51, %v1061_v21  ;;  %vm1064_vm11 = vcmp.eq.f32.partialorder %v1035_v49, %v1061_v21  ;;  %vm1065_vm12 = vcmp.eq.f32.partialorder %v1036_v4, %v1061_v21 }
 0x9da   :  { %vm1066_vm13 = vcmp.eq.f32.partialorder %v1042_v5, %v1061_v21  ;;  %v1067_v22 = vsel %vm1062_vm9, %v2381_v36, 40  ;;  %v1069_v23 = vsel %vm1064_vm11, %v2498_v18, 40  ;;  %v1068_v24 = vsel %vm1063_vm10, %v2501_v19, 40 }
 0x9db   :  { %v1070_v25 = vsel %vm1065_vm12, %v2504_v20, 40  ;;  %v1071_v26 = vsel %vm1066_vm13, %v2406_v46, 40  ;;  %v1072_v27 = vsel %vm968_vm8, %v1067_v22, 2147483647  ;;  %v1074_v31 = vsel %vm968_vm8, %v1069_v23, 2147483647 }
 0x9dc   :  { %v1076_v29 = vsel %vm968_vm8, %v1071_v26, 2147483647  ;;  %v1075_v32 = vsel %vm968_vm8, %v1070_v25, 2147483647  ;;  %v1073_v35 = vsel %vm968_vm8, %v1068_v24, 2147483647 }
 0x9dd   :  { %vm1077_vm14 = vcmp.lt.s32.totalorder %v1072_v27, %v1076_v29  ;;  %vm1081_vm15 = vcmp.lt.s32.totalorder %v1074_v31, %v1075_v32 }
 0x9de   :  { %v1078_v43 = vsel %vm1077_vm14, %v1072_v27, %v1076_v29  ;;  %v1082_v48 = vsel %vm1081_vm15, %v1074_v31, %v1075_v32  ;;  %vm1189_vm14 = vcmp.lt.s32.totalorder %v2504_v20, 28 }
 0x9df   :  { %vm1079_vm0 = vcmp.lt.s32.totalorder %v1078_v43, %v1073_v35 }
 0x9e0   :  { %v1080_v47 = vsel %vm1079_vm0, %v1078_v43, %v1073_v35  ;;  %v1180_v43 = vstv %s2680_s0 }
 0x9e1   :  { %vm1083_vm1 = vcmp.lt.s32.totalorder %v1080_v47, %v1082_v48  ;;  %vm1184_vm13 = vcmp.ge.s32.totalorder %v2504_v20, %v1180_v43  ;;  %vm1181_vm15 = vcmp.ge.s32.totalorder %v2381_v36, %v1180_v43  ;;  %vm1183_vm0 = vcmp.ge.s32.totalorder %v2498_v18, %v1180_v43 }
 0x9e2   :  { %v1084_v52 = vsel %vm1083_vm1, %v1080_v47, %v1082_v48  ;;  %vm1194_vm1 = vmand %vm1184_vm13, %vm1189_vm14 }
 0x9e3   :  { %v1086_v53 = vshra.s32 %v1084_v52, 16  ;;  %v1085_v55 = vand.u32 65535, %v1084_v52 }
 0x9e5   :  { %v1088_v33 = vcvt.s32.f32 %v1086_v53  ;;  %v1087_v37 = vcvt.s32.f32 %v1085_v55 }
 0x9e7   :  { %1089 = vmin.xlane.f32.xlu1 %v1088_v33 }
 0xa74   :  { %v1090_v56 = vpop.xlane.xlu1 %1089 }
 0xa75   :  { %vm1091_vm2 = vcmp.eq.f32.partialorder %v1088_v33, %v1090_v56  ;;  %v1096_v58 = vcvt.f32.s32 %v1090_v56 }
 0xa76   :  { %v1092_v57 = vsel %vm1091_vm2, %v1087_v37, inf }
 0xa77   :  { %1093 = vmin.xlane.f32.xlu0 %v1092_v57  ;;  %v1097_v59 = vshll.u32 %v1096_v58, 16 }
 0xb04   :  { %v1094_v41 = vpop.xlane.xlu0 %1093 }
 0xb05   :  { %v1095_v60 = vcvt.f32.s32 %v1094_v41 }
 0xb07   :  { %v1098_v45 = vadd.s32 %v1097_v59, %v1095_v60 }
 0xb09   :  { %v1099_v61 = vrot.slane %v1098_v45, 4 }
 0xb0b   :  { %vm1100_vm3 = vcmp.lt.s32.totalorder %v1098_v45, %v1099_v61 }
 0xb0c   :  { %v1101_v62 = vsel %vm1100_vm3, %v1098_v45, %v1099_v61  ;;  %vm1182_vm3 = vcmp.ge.s32.totalorder %v2501_v19, %v1180_v43 }
 0xb0d   :  { %v1102_v63 = vrot.slane %v1101_v62, 2 }
 0xb0f   :  { %vm1103_vm4 = vcmp.lt.s32.totalorder %v1101_v62, %v1102_v63 }
 0xb10   :  { %v1104_v2 = vsel %vm1103_vm4, %v1101_v62, %v1102_v63  ;;  %vm1211_vm4 = vcmask 15368  }
 0xb11   :  { %v1105_v3 = vrot.slane %v1104_v2, 1 }
 0xb13   :  { %vm1106_vm6 = vcmp.lt.s32.totalorder %v1104_v2, %v1105_v3 }
 0xb14   :  { %v1107_v49 = vsel %vm1106_vm6, %v1104_v2, %v1105_v3 }
 0xb15   :  { %2020 = vpush %v1107_v49 }
 0xb46   :  { %s2021_s14 = spop %2020 }
 0xb47   :  { %v2516_v4 = vstv %s2021_s14  ;;  %1383 = sst [smem:[#allocation6]] %s2021_s14 }
 0xb48   :  { %vm1111_vm7 = vcmp.eq.s32.totalorder %v2501_v19, %v2516_v4  ;;  %vm1110_vm9 = vcmp.eq.s32.totalorder %v2381_v36, %v2516_v4  ;;  %vm1112_vm10 = vcmp.eq.s32.totalorder %v2498_v18, %v2516_v4  ;;  %vm1113_vm11 = vcmp.eq.s32.totalorder %v2504_v20, %v2516_v4 }
 0xb49   :  { %v1427_v39 = vsel %vm1111_vm7, 1.0, %v2108_v1  ;;  %v1426_v42 = vsel %vm1110_vm9, 1.0, %v2108_v1  ;;  %v1428_v6 = vsel %vm1112_vm10, 1.0, %v2108_v1  ;;  %v1429_v44 = vsel %vm1113_vm11, 1.0, %v2108_v1  ;;  %vm2572_vm2 = vmor %vm1181_vm15, %vm1110_vm9 }
 0xb4a   :  { %v1126_v51 = vmul.f32 %v1427_v39, %v2377_v30  ;;  %v1125_v5 = vmul.f32 %v1426_v42, %v2375_v28  ;;  %v1127_v7 = vmul.f32 %v1428_v6, %v2379_v34  ;;  %vm1114_vm12 = vcmp.eq.s32.totalorder %v2406_v46, %v2516_v4  ;;  %vm2585_vm6 = vmor %vm1183_vm0, %vm1112_vm10 }
 0xb4b   :  { %v1128_v8 = vmul.f32 %v1429_v44, %v2393_v40  ;;  %v1430_v9 = vsel %vm1114_vm12, 1.0, %v2108_v1  ;;  %vm2593_vm9 = vmor %vm1194_vm1, %vm1113_vm11 }
 0xb4c   :  { %1137 = vrot.lane.b32.xlu0 %v1126_v51, %s2109_s4  ;;  %1135 = vrot.lane.b32.xlu1 %v1125_v5, %s2109_s4  ;;  %v1129_v10 = vmul.f32 %v1430_v9, %v2428_v54  ;;  %vm2606_vm10 = vmor %vm1182_vm3, %vm1111_vm7 }
 0xb50   :  { %1139 = vrot.lane.b32.xlu1 %v1127_v7, %s2109_s4 }
 0xb54   :  { %1141 = vrot.lane.b32.xlu1 %v1128_v8, %s2109_s4 }
 0xb58   :  { %1143 = vrot.lane.b32.xlu1 %v1129_v10, %s2109_s4 }
 0xbbe   :  { %v1136_v11 = vpop.permute.xlu1 %1135  ;;  %v1138_v12 = vpop.permute.xlu0 %1137 }
 0xbbf   :  { %v1151_v0 = vsel %vm968_vm8, %v1138_v12, 0.0  ;;  %v1150_v50 = vsel %vm968_vm8, %v1136_v11, 0.0 }
 0xbc0   :  { %v1152_v15 = vadd.f32 %v1151_v0, %v1150_v50 }
 0xbc2   :  { %v1140_v13 = vpop.permute.xlu1 %1139 }
 0xbc3   :  { %v1153_v14 = vsel %vm968_vm8, %v1140_v13, 0.0 }
 0xbc4   :  { %v1154_v21 = vadd.f32 %v1153_v14, %v1152_v15 }
 0xbc6   :  { %v1142_v16 = vpop.permute.xlu1 %1141 }
 0xbc7   :  { %v1155_v17 = vsel %vm968_vm8, %v1142_v16, 0.0 }
 0xbc8   :  { %v1156_v22 = vadd.f32 %v1155_v17, %v1154_v21 }
 0xbca   :  { %v1144_v1 = vpop.permute.xlu1 %1143 }
 0xbcb   :  { %v1157_v23 = vsel %vm968_vm8, %v1144_v1, 0.0 }
 0xbcc   :  { %v1158_v24 = vadd.f32 %v1157_v23, %v1156_v22 }
 0xbce   :  { %1159 = vadd.xlane.f32.xlu0 %v1158_v24 }
 0xc5b   :  { %v1160_v25 = vpop.xlane.xlu0 %1159 }
 0xc5c   :  { %v1161_v26 = vrot.slane %v1160_v25, 4 }
 0xc5e   :  { %v1162_v27 = vadd.f32 %v1161_v26, %v1160_v25 }
 0xc60   :  { %v1163_v29 = vrot.slane %v1162_v27, 2 }
 0xc62   :  { %v1164_v31 = vadd.f32 %v1163_v29, %v1162_v27 }
 0xc64   :  { %v1165_v32 = vrot.slane %v1164_v31, 1 }
 0xc66   :  { %v1166_v35 = vadd.f32 %v1165_v32, %v1164_v31 }
 0xc68   :  { %2022 = vpush %v1166_v35 }
 0xc99   :  { %s2023_s17 = spop %2022 }
 0xc9a   :  { %v1168_v47 = vstv %s2023_s17 }
 0xc9b   :  { %v1169_v48 = vadd.f32 %v1168_v47, %v2375_v28  ;;  %v1170_v52 = vadd.f32 %v1168_v47, %v2377_v30  ;;  %v1171_v53 = vadd.f32 %v1168_v47, %v2379_v34  ;;  %v1172_v33 = vadd.f32 %v1168_v47, %v2393_v40 }
 0xc9c   :  { %v1173_v56 = vadd.f32 %v1168_v47, %v2428_v54 }
 0xc9d   :  { %v1174_v28 = vadd.f32 %v2386_v38, %v1169_v48  ;;  %v1175_v30 = vadd.f32 %v2386_v38, %v1170_v52  ;;  %v1176_v34 = vadd.f32 %v2386_v38, %v1171_v53  ;;  %v1177_v40 = vadd.f32 %v2386_v38, %v1172_v33 }
 0xc9e   :  { %v1178_v54 = vadd.f32 %v2386_v38, %v1173_v56 }
 0xc9f   :  { %v1201_v58 = vsel %vm2572_vm2, 0.0, %v1174_v28  ;;  %v1203_v41 = vsel %vm2585_vm6, 0.0, %v1176_v34  ;;  %v1204_v59 = vsel %vm2593_vm9, 0.0, %v1177_v40  ;;  %v1202_v61 = vsel %vm2606_vm10, 0.0, %v1175_v30 }
 0xca0   :  { %v1205_v60 = vsel %vm1114_vm12, 0.0, %v1178_v54  ;;  %v1212_v45 = vsel %vm1211_vm4, %v1201_v58, -inf  ;;  %v1214_v63 = vsel %vm1211_vm4, %v1203_v41, -inf  ;;  %v1215_v2 = vsel %vm1211_vm4, %v1204_v59, -inf }
 0xca1   :  { %v1210_v62 = vsel %vm938_vm5, %v1205_v60, -inf  ;;  %v1213_v39 = vsel %vm1211_vm4, %v1202_v61, -inf  ;;  %v1219_v51 = vmax.f32 %v1214_v63, %v1215_v2 }
 0xca2   :  { %v1216_v3 = vsel %vm1211_vm4, %v1210_v62, -inf }
 0xca3   :  { %v1217_v49 = vmax.f32 %v1212_v45, %v1216_v3 }
 0xca5   :  { %v1218_v42 = vmax.f32 %v1217_v49, %v1213_v39 }
 0xca7   :  { %v1220_v5 = vmax.f32 %v1218_v42, %v1219_v51 }
 0xca9   :  { %1221 = vmax.xlane.f32.xlu1 %v1220_v5 }
 0xd36   :  { %v1222_v6 = vpop.xlane.xlu1 %1221 }
 0xd37   :  { %v1223_v7 = vrot.slane %v1222_v6, 4 }
 0xd39   :  { %v1224_v44 = vmax.f32 %v1222_v6, %v1223_v7 }
 0xd3b   :  { %v1225_v8 = vrot.slane %v1224_v44, 2 }
 0xd3d   :  { %v1226_v9 = vmax.f32 %v1224_v44, %v1225_v8 }
 0xd3f   :  { %v1227_v10 = vrot.slane %v1226_v9, 1 }
 0xd41   :  { %v1228_v11 = vmax.f32 %v1226_v9, %v1227_v10 }
 0xd43   :  { %2024 = vpush %v1228_v11 }
 0xd74   :  { %s2025_s0 = spop %2024 }
 0xd75   :  { %v1230_v12 = vstv %s2025_s0 }
 0xd76   :  { %v1231_v13 = vsub.f32 %v1201_v58, %v1230_v12  ;;  %v1232_v0 = vsub.f32 %v1202_v61, %v1230_v12  ;;  %v1233_v50 = vsub.f32 %v1203_v41, %v1230_v12  ;;  %v1234_v14 = vsub.f32 %v1204_v59, %v1230_v12 }
 0xd77   :  { %v1235_v15 = vsub.f32 %v1210_v62, %v1230_v12 }
 0xd78   :  { %v1236_v16 = vmul.f32 1.442695, %v1231_v13  ;;  %v1238_v17 = vmul.f32 1.442695, %v1232_v0  ;;  %v1240_v21 = vmul.f32 1.442695, %v1233_v50 }
 0xd79   :  { %v1242_v22 = vmul.f32 1.442695, %v1234_v14  ;;  %v1244_v1 = vmul.f32 1.442695, %v1235_v15 }
 0xd7a   :  { %2053 = vpow2.f32 %v1236_v16 }
 0xd7b   :  { %2055 = vpow2.f32 %v1238_v17 }
 0xd7c   :  { %2057 = vpow2.f32 %v1240_v21 }
 0xd7d   :  { %2059 = vpow2.f32 %v1242_v22 }
 0xd7e   :  { %2061 = vpow2.f32 %v1244_v1 }
 0xd84   :  { %v2054_v23 = vpop.eup %2053 }
 0xd85   :  { %v2056_v24 = vpop.eup %2055  ;;  %1256 = vrot.lane.b32.xlu0 %v2054_v23, %s2110_s18 }
 0xd86   :  { %1258 = vrot.lane.b32.xlu1 %v2056_v24, %s2110_s18  ;;  %v2058_v25 = vpop.eup %2057 }
 0xd87   :  { %v2060_v26 = vpop.eup %2059 }
 0xd88   :  { %v2062_v27 = vpop.eup %2061 }
 0xd89   :  { %1260 = vrot.lane.b32.xlu0 %v2058_v25, %s2110_s18  ;;  %v1250_v29 = vsel %vm938_vm5, %v2062_v27, 0.0 }
 0xd8a   :  { %1262 = vrot.lane.b32.xlu1 %v2060_v26, %s2110_s18 }
 0xd8d   :  { %1264 = vrot.lane.b32.xlu0 %v1250_v29, %s2110_s18 }
 0xdf7   :  { %v1257_v31 = vpop.permute.xlu0 %1256 }
 0xdf8   :  { %v1259_v32 = vpop.permute.xlu1 %1258  ;;  %v1271_v35 = vsel %vm968_vm8, %v1257_v31, 0.0 }
 0xdf9   :  { %v1272_v43 = vsel %vm968_vm8, %v1259_v32, 0.0 }
 0xdfa   :  { %v1273_v47 = vadd.f32 %v1272_v43, %v1271_v35 }
 0xdfb   :  { %v1261_v48 = vpop.permute.xlu0 %1260 }
 0xdfc   :  { %v1263_v52 = vpop.permute.xlu1 %1262  ;;  %v1274_v53 = vsel %vm968_vm8, %v1261_v48, 0.0 }
 0xdfd   :  { %v1275_v33 = vadd.f32 %v1274_v53, %v1273_v47  ;;  %v1276_v56 = vsel %vm968_vm8, %v1263_v52, 0.0 }
 0xdff   :  { %v1265_v28 = vpop.permute.xlu0 %1264  ;;  %v1277_v30 = vadd.f32 %v1276_v56, %v1275_v33 }
 0xe00   :  { %v1278_v34 = vsel %vm968_vm8, %v1265_v28, 0.0 }
 0xe01   :  { %v1279_v40 = vadd.f32 %v1278_v34, %v1277_v30 }
 0xe03   :  { %1280 = vadd.xlane.f32.xlu1 %v1279_v40 }
 0xe90   :  { %v1281_v54 = vpop.xlane.xlu1 %1280 }
 0xe91   :  { %v1282_v58 = vrot.slane %v1281_v54, 4 }
 0xe93   :  { %v1283_v41 = vadd.f32 %v1282_v58, %v1281_v54 }
 0xe95   :  { %v1284_v59 = vrot.slane %v1283_v41, 2 }
 0xe97   :  { %v1285_v60 = vadd.f32 %v1284_v59, %v1283_v41 }
 0xe99   :  { %v1286_v45 = vrot.slane %v1285_v60, 1 }
 0xe9b   :  { %v1287_v61 = vadd.f32 %v1286_v45, %v1285_v60 }
 0xe9d   :  { %2026 = vpush %v1287_v61 }
 0xece   :  { %s2027_s19 = spop %2026 }
 0xecf   :  { %v1289_v62 = vstv %s2027_s19 }
 0xed0   :  { %2063 = vrcp.f32 %v1289_v62 }
 0xeda   :  { %v2064_v63 = vpop.eup %2063 }
 0xedb   :  { %v1291_v2 = vmul.f32 %v2064_v63, %v2054_v23  ;;  %v1292_v3 = vmul.f32 %v2064_v63, %v2056_v24  ;;  %v1293_v49 = vmul.f32 %v2064_v63, %v2058_v25  ;;  %v1294_v39 = vmul.f32 %v2064_v63, %v2060_v26 }
 0xedc   :  { %v1295_v42 = vmul.f32 %v2064_v63, %v1250_v29 }
 0xedd   :  { %v1296_v51 = vsel %vm2572_vm2, -1.0, %v1291_v2  ;;  %v1298_v5 = vsel %vm2585_vm6, -1.0, %v1293_v49  ;;  %v1299_v6 = vsel %vm2593_vm9, -1.0, %v1294_v39  ;;  %1377 = vst.msk [vmem:[%s2686_s6] sm:$0xff] %vm1211_vm4, %v1291_v2  ;;  %1378 = vst.msk [vmem:[%s2686_s6 + $0x8] sm:$0xff] %vm1211_vm4, %v1292_v3  ;;  %v1297_v57 = vsel %vm2606_vm10, -1.0, %v1292_v3 }
 0xede   :  { %1379 = vst.msk [vmem:[%s2686_s6 + $0x10] sm:$0xff] %vm1211_vm4, %v1293_v49  ;;  %1380 = vst.msk [vmem:[%s2686_s6 + $0x18] sm:$0xff] %vm1211_vm4, %v1294_v39  ;;  %v1300_v55 = vsel %vm1114_vm12, -1.0, %v1295_v42  ;;  %v1306_v37 = vsel %vm1211_vm4, %v1296_v51, -inf  ;;  %v1308_v44 = vsel %vm1211_vm4, %v1298_v5, -inf  ;;  %v1309_v8 = vsel %vm1211_vm4, %v1299_v6, -inf }
 0xedf   :  { %1381 = vst.msk [vmem:[%s2686_s6 + $0x20] sm:$0xff] %vm1211_vm4, %v1295_v42  ;;  %v1305_v7 = vsel %vm938_vm5, %v1300_v55, -2.0  ;;  %v1307_v10 = vsel %vm1211_vm4, %v1297_v57, -inf  ;;  %v1313_v12 = vmax.f32 %v1308_v44, %v1309_v8 }
 0xee0   :  { %v1310_v4 = vsel %vm1211_vm4, %v1305_v7, -inf }
 0xee1   :  { %v1311_v9 = vmax.f32 %v1306_v37, %v1310_v4 }
 0xee3   :  { %v1312_v11 = vmax.f32 %v1311_v9, %v1307_v10 }
 0xee5   :  { %v1314_v13 = vmax.f32 %v1312_v11, %v1313_v12 }
 0xee7   :  { %1315 = vmax.xlane.f32.xlu0 %v1314_v13 }
 0xf74   :  { %v1316_v0 = vpop.xlane.xlu0 %1315 }
 0xf75   :  { %v1317_v50 = vrot.slane %v1316_v0, 4 }
 0xf77   :  { %v1318_v38 = vmax.f32 %v1316_v0, %v1317_v50 }
 0xf79   :  { %v1319_v14 = vrot.slane %v1318_v38, 2 }
 0xf7b   :  { %v1320_v15 = vmax.f32 %v1318_v38, %v1319_v14 }
 0xf7d   :  { %v1321_v16 = vrot.slane %v1320_v15, 1 }
 0xf7f   :  { %v1322_v17 = vmax.f32 %v1320_v15, %v1321_v16 }
 0xf81   :  { %2028 = vpush %v1322_v17 }
 0xfb2   :  { %s2029_s6 = spop %2028 }
 0xfb3   :  { %v1324_v21 = vstv %s2029_s6 }
 0xfb4   :  { %vm1325_vm5 = vcmp.eq.f32.partialorder %v1296_v51, %v1324_v21  ;;  %vm1326_vm8 = vcmp.eq.f32.partialorder %v1297_v57, %v1324_v21  ;;  %vm1327_vm7 = vcmp.eq.f32.partialorder %v1298_v5, %v1324_v21  ;;  %vm1328_vm11 = vcmp.eq.f32.partialorder %v1299_v6, %v1324_v21 }
 0xfb5   :  { %vm1329_vm12 = vcmp.eq.f32.partialorder %v1305_v7, %v1324_v21  ;;  %v1330_v22 = vsel %vm1325_vm5, %v2381_v36, 40  ;;  %v1332_v1 = vsel %vm1327_vm7, %v2498_v18, 40  ;;  %v1331_v23 = vsel %vm1326_vm8, %v2501_v19, 40 }
 0xfb6   :  { %v1333_v24 = vsel %vm1328_vm11, %v2504_v20, 40  ;;  %v1334_v25 = vsel %vm1329_vm12, %v2406_v46, 40  ;;  %v1335_v26 = vsel %vm1211_vm4, %v1330_v22, 2147483647  ;;  %v1337_v29 = vsel %vm1211_vm4, %v1332_v1, 2147483647 }
 0xfb7   :  { %v1339_v27 = vsel %vm1211_vm4, %v1334_v25, 2147483647  ;;  %v1338_v31 = vsel %vm1211_vm4, %v1333_v24, 2147483647  ;;  %v1336_v36 = vsel %vm1211_vm4, %v1331_v23, 2147483647 }
 0xfb8   :  { %vm1340_vm13 = vcmp.lt.s32.totalorder %v1335_v26, %v1339_v27  ;;  %vm1344_vm14 = vcmp.lt.s32.totalorder %v1337_v29, %v1338_v31 }
 0xfb9   :  { %v1341_v32 = vsel %vm1340_vm13, %v1335_v26, %v1339_v27  ;;  %v1345_v19 = vsel %vm1344_vm14, %v1337_v29, %v1338_v31 }
 0xfba   :  { %vm1342_vm15 = vcmp.lt.s32.totalorder %v1341_v32, %v1336_v36 }
 0xfbb   :  { %v1343_v18 = vsel %vm1342_vm15, %v1341_v32, %v1336_v36 }
 0xfbc   :  { %vm1346_vm0 = vcmp.lt.s32.totalorder %v1343_v18, %v1345_v19 }
 0xfbd   :  { %v1347_v20 = vsel %vm1346_vm0, %v1343_v18, %v1345_v19 }
 0xfbe   :  { %v1349_v35 = vshra.s32 %v1347_v20, 16  ;;  %v1348_v43 = vand.u32 65535, %v1347_v20 }
 0xfc0   :  { %v1351_v46 = vcvt.s32.f32 %v1349_v35  ;;  %v1350_v48 = vcvt.s32.f32 %v1348_v43 }
 0xfc2   :  { %1352 = vmin.xlane.f32.xlu0 %v1351_v46 }
0x104f   :  { %v1353_v47 = vpop.xlane.xlu0 %1352 }
0x1050   :  { %vm1354_vm1 = vcmp.eq.f32.partialorder %v1351_v46, %v1353_v47  ;;  %v1359_v53 = vcvt.f32.s32 %v1353_v47 }
0x1051   :  { %v1355_v52 = vsel %vm1354_vm1, %v1350_v48, inf }
0x1052   :  { %1356 = vmin.xlane.f32.xlu0 %v1355_v52  ;;  %v1360_v56 = vshll.u32 %v1359_v53, 16 }
0x10df   :  { %v1357_v33 = vpop.xlane.xlu0 %1356 }
0x10e0   :  { %v1358_v28 = vcvt.f32.s32 %v1357_v33 }
0x10e2   :  { %v1361_v30 = vadd.s32 %v1360_v56, %v1358_v28 }
0x10e4   :  { %v1362_v34 = vrot.slane %v1361_v30, 4 }
0x10e6   :  { %vm1363_vm2 = vcmp.lt.s32.totalorder %v1361_v30, %v1362_v34 }
0x10e7   :  { %v1364_v40 = vsel %vm1363_vm2, %v1361_v30, %v1362_v34 }
0x10e8   :  { %v1365_v54 = vrot.slane %v1364_v40, 2 }
0x10ea   :  { %vm1366_vm3 = vcmp.lt.s32.totalorder %v1364_v40, %v1365_v54 }
0x10eb   :  { %v1367_v58 = vsel %vm1366_vm3, %v1364_v40, %v1365_v54 }
0x10ec   :  { %v1368_v41 = vrot.slane %v1367_v58, 1 }
0x10ee   :  { %vm1369_vm4 = vcmp.lt.s32.totalorder %v1367_v58, %v1368_v41 }
0x10ef   :  { %v1370_v59 = vsel %vm1369_vm4, %v1367_v58, %v1368_v41 }
0x10f0   :  { %2030 = vpush %v1370_v59 }
0x1121   :  { %s2031_s30 = spop %2030 }
0x1122   :  { %1385 = sst [smem:[#allocation6 + $0x1]] %s2031_s30 }
0x1123   :  { %2098 = shalt.err (!%p2095_p12)
}
0x1124   :  { %s2111_s9 = smov [#allocation6]  }
0x1125   :  { %1397 = dma.smem_to_vmem %s2111_s9, 16, %s1395_s29, [#allocation5]  }
0x1126   :  { %2101 = dma.done.wait [#allocation5], 16  }
0x1127   :  { %2102 = vsyncadd [#allocation5], 4294967280 }
0x1128   :  { %1403 = sfence }
0x1129   :  { %1404 = vsyncpa [#allocation4], 1 }
0x112a   :  { %1405 = vsyncpa [#allocation5], 1 }

</bundles_post_ra>
